<compile_context>
chip_gen: v6e
topology: v6e:2x2x1
jax: 0.10.0
libtpu: 0.0.40
codegen_flags: <defaults>
</compile_context>

<pallas_src>
import numpy as np
import jax
import jax.numpy as jnp
from jax import lax
from jax.experimental import pallas as pl
from jax.experimental.pallas import tpu as pltpu


def _maq_kernel(x_ref, ab_ref, cbt_ref, cc_ref, bias_ref, ctx_ref,
                q_ref, codes_ref, sse_ref, music_ref,
                sse_lane, music_lane, carry_sim, carry_code):
    j = pl.program_id(2)                  # T-tile index within a chunk (innermost, "arbitrary")
    n_j = pl.num_programs(2)
    Kp = cc_ref.shape[0]                  # padded codebook size (multiple of 8)
    tT = x_ref.shape[2]

    @pl.when(j == 0)
    def _():
        # per-(b, chunk) lane-wide accumulators + cross-tile temporal carry
        sse_lane[...] = jnp.zeros_like(sse_lane)
        music_lane[...] = jnp.zeros_like(music_lane)
        carry_sim[...] = jnp.zeros_like(carry_sim)
        carry_code[...] = jnp.zeros_like(carry_code)

    x_b = x_ref[0]                        # [D, tT]  (time on lanes)
    ctx_b = ctx_ref[0]                    # [3, tT]

    # ---- one fused MXU call: rows [0:Kp) -> 2*(c.x), rows [Kp:Kp+3) -> music proj ----
    prod = jnp.dot(ab_ref[...], x_b, preferred_element_type=jnp.float32,
                   precision=lax.Precision.HIGHEST)                      # [Kp+3, tT]
    scores = cc_ref[...] - prod[:Kp]      # ||c_k||^2 - 2 x.c_k  (pad rows are huge)
    mp = prod[Kp:] + bias_ref[...]        # [3, tT] music projection

    # ---- nearest codebook entry (||x||^2 is per-column constant -> irrelevant) ----
    min_s = jnp.min(scores, axis=0, keepdims=True)                       # [1, tT]
    iota_kf = lax.broadcasted_iota(jnp.int32, (Kp, tT), 0).astype(jnp.float32)
    codes_f = jnp.min(jnp.where(scores == min_s, iota_kf, jnp.float32(Kp)),
                      axis=0, keepdims=True)                             # [1, tT] exact ints
    codes_ref[0] = codes_f.astype(jnp.int32)

    onehot = (iota_kf == codes_f).astype(jnp.float32)                    # [Kp, tT]
    quant = jnp.dot(cbt_ref[...], onehot, preferred_element_type=jnp.float32,
                    precision=lax.Precision.HIGHEST)                     # [D, tT]
    q_ref[0] = quant.astype(q_ref.dtype)

    # ---- algebraic SSE: ||x - c*||^2 = ||x||^2 + (||c*||^2 - 2 x.c*) = ||x||^2 + min_s ----
    xx = jnp.sum(x_b * x_b, axis=0, keepdims=True)                       # [1, tT]
    sse_lane[...] += xx + min_s

    # ---- cosine similarity with the music context ----
    dots = jnp.sum(mp * ctx_b, axis=0, keepdims=True)                    # [1, tT]
    na2 = jnp.sum(mp * mp, axis=0, keepdims=True)
    nb2 = jnp.sum(ctx_b * ctx_b, axis=0, keepdims=True)
    sim = dots * lax.rsqrt(jnp.maximum(na2 * nb2, 1e-16))                # [1, tT]

    # ---- temporal consistency: |sim_i - sim_{i-1}| * (code_i != code_{i-1}) ----
    lane = lax.broadcasted_iota(jnp.int32, (1, tT), 1)
    prev_sim = jnp.where(lane == 0, carry_sim[...], pltpu.roll(sim, 1, 1))
    prev_code = jnp.where(lane == 0, carry_code[...], pltpu.roll(codes_f, 1, 1))
    contrib = jnp.abs(sim - prev_sim) * (codes_f != prev_code).astype(jnp.float32)
    valid = jnp.logical_or(lane > 0, j > 0)   # first step of a chunk has no in-kernel predecessor
    music_lane[...] += jnp.where(valid, contrib, 0.0)

    # static last-lane slices (no masked reduce) -> carry for the next tile
    carry_sim[...] = sim[:, tT - 1:tT]
    carry_code[...] = codes_f[:, tT - 1:tT]

    # ---- epilogue: single cross-lane reduce + narrow store per (b, chunk) ----
    @pl.when(j == n_j - 1)
    def _():
        sse_ref[0] = jnp.sum(sse_lane[...], keepdims=True)
        music_ref[0] = jnp.sum(music_lane[...], keepdims=True)


def music_aware_quantizer(x, music_context, codebook, w_proj, b_proj,
                          music_weight=0.1, tile_t=None, n_time_chunks=None):
    """x: [B, D, T] f32, music_context: [B, 3, T] f32 (native PyTorch layout)."""
    B, D, T = x.shape
    K = codebook.shape[0]
    K_pad = pl.cdiv(K, 8) * 8

    # Megacore (v7x) coverage: when a single batch can't fill 2 TensorCores,
    # split time into 2 parallel chunks; the chunk-boundary temporal term is
    # added back in the wrapper from the emitted codes.
    if n_time_chunks is None:
        n_time_chunks = 2 if (B == 1 and T % 2 == 0 and (T // 2) % 128 == 0) else 1
    nC = n_time_chunks
    assert T % nC == 0
    chunk_len = T // nC

    # conservative VMEM estimate per grid step (generation aware: v7x only has 64 MiB)
    def vmem_estimate(tt):
        io = 2 * (2 * D + 8) * tt * 4                               # double-buffered x, q, codes, ctx
        consts = 2 * ((K_pad + 3) * D + D * K_pad + K_pad + 3) * 4  # stacked mat, cb^T, ||c||^2, bias
        interm = (2 * K_pad + 2 * D + 16) * tt * 4                  # prod/scores/onehot/quant/...
        scratch = (2 * tt + 8) * 4
        return io + consts + interm + scratch

    budget = 24 * 1024 * 1024
    if tile_t is None:
        cands = sorted({chunk_len} | {c for c in range(128, chunk_len, 128)
                                      if chunk_len % c == 0}, reverse=True)
        tile_t = cands[-1]
        for c in cands:
            if vmem_estimate(c) <= budget:
                tile_t = c
                break
    assert chunk_len % tile_t == 0 and (tile_t % 128 == 0 or tile_t == T)
    nT = chunk_len // tile_t

    x_f = x.astype(jnp.float32)
    ctx_f = music_context.astype(jnp.float32)
    cb = codebook.astype(jnp.float32)                       # [K, D]
    w = jnp.asarray(w_proj, jnp.float32)                    # [3, D]
    bias = jnp.asarray(b_proj, jnp.float32).reshape(3, 1)   # [3, 1]

    pad = K_pad - K
    cb_pad = jnp.pad(cb, ((0, pad), (0, 0)))                # zero rows for padding
    ab = jnp.concatenate([2.0 * cb_pad, w], axis=0)         # [(K_pad+3), D] fused matmul operand
    cbt = cb_pad.T                                          # [D, K_pad]   (hoisted transpose)
    cc = jnp.sum(cb_pad * cb_pad, axis=1, keepdims=True)    # [K_pad, 1]   (hoisted ||c||^2)
    if pad:
        cc = cc.at[K:].set(jnp.float32(1e30))               # padded rows never win the argmin

    BC = B * nC
    out_shapes = (
        jax.ShapeDtypeStruct((B, D, T), jnp.float32),    # quantized (native layout)
        jax.ShapeDtypeStruct((B, 1, T), jnp.int32),      # codes (lane-dense)
        jax.ShapeDtypeStruct((BC, 1, 1), jnp.float32),   # per-(b, chunk) sum of squared errors
        jax.ShapeDtypeStruct((BC, 1, 1), jnp.float32),   # per-(b, chunk) music-consistency sum
    )

    grid_spec = pltpu.PrefetchScalarGridSpec(
        num_scalar_prefetch=0,
        grid=(B, nC, nT),
        in_specs=[
            pl.BlockSpec((1, D, tile_t), lambda b, c, j: (b, 0, c * nT + j)),   # x
            pl.BlockSpec((K_pad + 3, D), lambda b, c, j: (0, 0)),               # [2*cb ; W]
            pl.BlockSpec((D, K_pad), lambda b, c, j: (0, 0)),                   # cb^T
            pl.BlockSpec((K_pad, 1), lambda b, c, j: (0, 0)),                   # ||c||^2
            pl.BlockSpec((3, 1), lambda b, c, j: (0, 0)),                       # proj bias
            pl.BlockSpec((1, 3, tile_t), lambda b, c, j: (b, 0, c * nT + j)),   # music context
        ],
        out_specs=[
            pl.BlockSpec((1, D, tile_t), lambda b, c, j: (b, 0, c * nT + j)),
            pl.BlockSpec((1, 1, tile_t), lambda b, c, j: (b, 0, c * nT + j)),
            pl.BlockSpec((1, 1, 1), lambda b, c, j: (b * nC + c, 0, 0)),
            pl.BlockSpec((1, 1, 1), lambda b, c, j: (b * nC + c, 0, 0)),
        ],
        scratch_shapes=[
            pltpu.VMEM((1, tile_t), jnp.float32),   # lane-wide SSE accumulator
            pltpu.VMEM((1, tile_t), jnp.float32),   # lane-wide music accumulator
            pltpu.VMEM((1, 1), jnp.float32),        # carry: last sim of previous tile
            pltpu.VMEM((1, 1), jnp.float32),        # carry: last code of previous tile
        ],
    )

    est = vmem_estimate(tile_t)
    vmem_limit = int(min(max(2 * est, 32 * 1024 * 1024), 48 * 1024 * 1024))

    q, codes3, sse_bc, music_bc = pl.pallas_call(
        _maq_kernel,
        out_shape=out_shapes,
        grid_spec=grid_spec,
        compiler_params=pltpu.CompilerParams(
            dimension_semantics=("parallel", "parallel", "arbitrary"),
            vmem_limit_bytes=vmem_limit),
    )(x_f, ab, cbt, cc, bias, ctx_f)

    codes = codes3.reshape(B, T)

    # tiny final reductions in the wrapper (keeps B / chunk grid axes fully parallel)
    mse = jnp.sum(sse_bc) / jnp.float32(B * T * D)

    music_total = jnp.sum(music_bc)
    if nC > 1:
        # add back the chunk-boundary temporal terms (codes from the kernel output,
        # sim recomputed for just 2*(nC-1) columns -> negligible work, no extra store stream)
        t0 = chunk_len * np.arange(1, nC)

        def sim_at(cols):
            xb = x_f[:, :, cols]                                        # [B, D, m]
            mpb = jnp.einsum("od,bdt->bot", w, xb,
                             precision=lax.Precision.HIGHEST) + bias[None]
            cxb = ctx_f[:, :, cols]
            num = jnp.sum(mpb * cxb, axis=1)
            den = jnp.maximum(jnp.sqrt(jnp.sum(mpb * mpb, axis=1)
                                       * jnp.sum(cxb * cxb, axis=1)), 1e-8)
            return num / den                                            # [B, m]

        s_prev, s_cur = sim_at(t0 - 1), sim_at(t0)
        music_total = music_total + jnp.sum(
            jnp.abs(s_cur - s_prev)
            * (codes[:, t0] != codes[:, t0 - 1]).astype(jnp.float32))

    ml = music_total / jnp.float32(B * (T - 1))

    # perplexity from the emitted codes (tiny histogram over B*T ints)
    avg = jnp.mean(jax.nn.one_hot(codes.reshape(-1), K, dtype=jnp.float32), axis=0)
    perplexity = jnp.exp(-jnp.sum(avg * jnp.log(avg + 1e-10)))

    return {
        "quantized": q,                          # [B, D, T], no layout round-trip
        "codes": codes,
        "commitment_loss": mse + jnp.float32(music_weight) * ml,
        "codebook_loss": mse,
        "perplexity": perplexity,
        "music_loss": ml,
    }


def _reference(x, ctx, cb, w, b, music_weight=0.1):
    """Pure-JAX mirror of the PyTorch forward (eval mode)."""
    B, D, T = x.shape
    K = cb.shape[0]
    hp = lax.Precision.HIGHEST
    x_flat = jnp.transpose(x, (0, 2, 1)).reshape(-1, D)
    d2 = (jnp.sum(x_flat ** 2, 1, keepdims=True)
          - 2.0 * jnp.dot(x_flat, cb.T, precision=hp)
          + jnp.sum(cb ** 2, 1)[None, :])
    codes = jnp.argmin(d2, axis=1)
    qf = cb[codes]
    mse = jnp.mean((qf - x_flat) ** 2)
    avg = jax.nn.one_hot(codes, K).mean(0)
    perp = jnp.exp(-jnp.sum(avg * jnp.log(avg + 1e-10)))
    mp = (jnp.dot(x_flat, w.T, precision=hp) + b).reshape(B, T, 3)
    ctx_bt = jnp.transpose(ctx, (0, 2, 1))
    sim = (jnp.sum(mp * ctx_bt, -1)
           / jnp.maximum(jnp.linalg.norm(mp, axis=-1)
                         * jnp.linalg.norm(ctx_bt, axis=-1), 1e-8))
    codes_bt = codes.reshape(B, T)
    ml = jnp.mean(jnp.abs(sim[:, :-1] - sim[:, 1:])
                  * (codes_bt[:, :-1] != codes_bt[:, 1:]).astype(jnp.float32))
    return {
        "quantized": jnp.transpose(qf.reshape(B, T, D), (0, 2, 1)),
        "codes": codes_bt,
        "commitment_loss": mse + music_weight * ml,
        "codebook_loss": mse,
        "perplexity": perp,
        "music_loss": ml,
    }


if __name__ == "__main__":
    B, D, T, K = 2, 32, 256, 24  # batch, codebook_dim, time, codebook_size

    key = jax.random.PRNGKey(0)
    kx, kc, kcb, kw, kb = jax.random.split(key, 5)
    x = jax.random.normal(kx, (B, D, T), jnp.float32)
    music_context = jax.random.normal(kc, (B, 3, T), jnp.float32)
    # codebook buffer ends up uniform(-1/K, 1/K) in __init__
    codebook = jax.random.uniform(kcb, (K, D), jnp.float32, -1.0 / K, 1.0 / K)
    bound = 1.0 / np.sqrt(D)  # nn.Linear-style init
    w_proj = jax.random.uniform(kw, (3, D), jnp.float32, -bound, bound)
    b_proj = jax.random.uniform(kb, (3,), jnp.float32, -bound, bound)

    def check(out, ref):
        np.testing.assert_array_equal(np.asarray(out["codes"]), np.asarray(ref["codes"]))
        for name in ("quantized", "commitment_loss", "codebook_loss",
                     "perplexity", "music_loss"):
            np.testing.assert_allclose(np.asarray(out[name]), np.asarray(ref[name]),
                                       rtol=1e-4, atol=1e-5)

    ref = _reference(x, music_context, codebook, w_proj, b_proj, 0.1)

    # (a) tile_t=128 -> grid (B, 1, 2): exercises the cross-tile temporal-consistency carry.
    out = music_aware_quantizer(x, music_context, codebook, w_proj, b_proj,
                                music_weight=0.1, tile_t=128)
    out = jax.tree_util.tree_map(jax.block_until_ready, out)
    check(out, ref)

    # (b) default tiling -> single full-T lane-dense tile per batch.
    out = music_aware_quantizer(x, music_context, codebook, w_proj, b_proj,
                                music_weight=0.1)
    out = jax.tree_util.tree_map(jax.block_until_ready, out)
    check(out, ref)

    # (c) B == 1 -> time-chunked parallel grid (v7x megacore) with wrapper-side
    #     chunk-boundary correction of the temporal-consistency term.
    x1, c1 = x[:1], music_context[:1]
    ref1 = _reference(x1, c1, codebook, w_proj, b_proj, 0.1)
    out1 = music_aware_quantizer(x1, c1, codebook, w_proj, b_proj, music_weight=0.1)
    out1 = jax.tree_util.tree_map(jax.block_until_ready, out1)
    check(out1, ref1)

    print("KERNEL_OK")
</pallas_src>

<mosaic_0001>
module attributes {stable_mosaic.version = 11 : i64} {
  func.func @_maq_kernel(%arg0: i32, %arg1: i32, %arg2: i32, %arg3: memref<1x32x128xf32, #tpu.memory_space<vmem>>, %arg4: memref<27x32xf32, #tpu.memory_space<vmem>>, %arg5: memref<32x24xf32, #tpu.memory_space<vmem>>, %arg6: memref<24x1xf32, #tpu.memory_space<vmem>>, %arg7: memref<3x1xf32, #tpu.memory_space<vmem>>, %arg8: memref<1x3x128xf32, #tpu.memory_space<vmem>>, %arg9: memref<1x32x128xf32, #tpu.memory_space<vmem>>, %arg10: memref<1x1x128xi32, #tpu.memory_space<vmem>>, %arg11: memref<1x1x1xf32, #tpu.memory_space<vmem>>, %arg12: memref<1x1x1xf32, #tpu.memory_space<vmem>>, %arg13: memref<1x128xf32, #tpu.memory_space<vmem>>, %arg14: memref<1x128xf32, #tpu.memory_space<vmem>>, %arg15: memref<1x1xf32, #tpu.memory_space<vmem>>, %arg16: memref<1x1xf32, #tpu.memory_space<vmem>>) attributes {dimension_semantics = [#tpu.dimension_semantics<parallel>, #tpu.dimension_semantics<parallel>, #tpu.dimension_semantics<arbitrary>], iteration_bounds = array<i64: 2, 1, 2>, scalar_prefetch = 0 : i64, scratch_operands = 4 : i64, tpu.core_type = #tpu.core_type<tc>, window_params = [{transform_indices = @transform_0, window_bounds = array<i64: 1, 32, 128>}, {pipeline_mode = #tpu.pipeline_mode<synchronous>, transform_indices = @transform_1, window_bounds = array<i64: 27, 32>}, {pipeline_mode = #tpu.pipeline_mode<synchronous>, transform_indices = @transform_2, window_bounds = array<i64: 32, 24>}, {pipeline_mode = #tpu.pipeline_mode<synchronous>, transform_indices = @transform_3, window_bounds = array<i64: 24, 1>}, {pipeline_mode = #tpu.pipeline_mode<synchronous>, transform_indices = @transform_4, window_bounds = array<i64: 3, 1>}, {transform_indices = @transform_5, window_bounds = array<i64: 1, 3, 128>}, {transform_indices = @transform_6, window_bounds = array<i64: 1, 32, 128>}, {transform_indices = @transform_7, window_bounds = array<i64: 1, 1, 128>}, {transform_indices = @transform_8, window_bounds = array<i64: 1, 1, 1>}, {transform_indices = @transform_9, window_bounds = array<i64: 1, 1, 1>}]} {
    %c0_i32 = arith.constant 0 : i32
    %0 = arith.cmpi eq, %arg2, %c0_i32 : i32
    %1 = arith.extui %0 : i1 to i32
    %c0_i32_0 = arith.constant 0 : i32
    %2 = arith.cmpi ne, %1, %c0_i32_0 : i32
    scf.if %2 {
      %cst_53 = arith.constant 0.000000e+00 : f32
      %99 = vector.broadcast %cst_53 : f32 to vector<1x128xf32>
      %c0_54 = arith.constant 0 : index
      %c0_55 = arith.constant 0 : index
      %100 = vector.load %arg13[%c0_54, %c0_55] : memref<1x128xf32, #tpu.memory_space<vmem>>, vector<1x128xf32>
      tpu.vector_store %arg13[%c0_54, %c0_55], %99 {strides = array<i32>} : memref<1x128xf32, #tpu.memory_space<vmem>>, vector<1x128xf32>,
      %cst_56 = arith.constant 0.000000e+00 : f32
      %101 = vector.broadcast %cst_56 : f32 to vector<1x128xf32>
      %c0_57 = arith.constant 0 : index
      %c0_58 = arith.constant 0 : index
      %102 = vector.load %arg14[%c0_57, %c0_58] : memref<1x128xf32, #tpu.memory_space<vmem>>, vector<1x128xf32>
      tpu.vector_store %arg14[%c0_57, %c0_58], %101 {strides = array<i32>} : memref<1x128xf32, #tpu.memory_space<vmem>>, vector<1x128xf32>,
      %cst_59 = arith.constant 0.000000e+00 : f32
      %103 = vector.broadcast %cst_59 : f32 to vector<1x1xf32>
      %c0_60 = arith.constant 0 : index
      %c0_61 = arith.constant 0 : index
      %104 = vector.load %arg15[%c0_60, %c0_61] : memref<1x1xf32, #tpu.memory_space<vmem>>, vector<1x1xf32>
      tpu.vector_store %arg15[%c0_60, %c0_61], %103 {strides = array<i32>} : memref<1x1xf32, #tpu.memory_space<vmem>>, vector<1x1xf32>,
      %cst_62 = arith.constant 0.000000e+00 : f32
      %105 = vector.broadcast %cst_62 : f32 to vector<1x1xf32>
      %c0_63 = arith.constant 0 : index
      %c0_64 = arith.constant 0 : index
      %106 = vector.load %arg16[%c0_63, %c0_64] : memref<1x1xf32, #tpu.memory_space<vmem>>, vector<1x1xf32>
      tpu.vector_store %arg16[%c0_63, %c0_64], %105 {strides = array<i32>} : memref<1x1xf32, #tpu.memory_space<vmem>>, vector<1x1xf32>,
    } else {
    }
    %c0 = arith.constant 0 : index
    %c0_1 = arith.constant 0 : index
    %c0_2 = arith.constant 0 : index
    %3 = vector.load %arg3[%c0, %c0_1, %c0_2] : memref<1x32x128xf32, #tpu.memory_space<vmem>>, vector<1x32x128xf32>
    %4 = vector.shape_cast %3 : vector<1x32x128xf32> to vector<32x128xf32>
    %c0_3 = arith.constant 0 : index
    %c0_4 = arith.constant 0 : index
    %c0_5 = arith.constant 0 : index
    %5 = vector.load %arg8[%c0_3, %c0_4, %c0_5] : memref<1x3x128xf32, #tpu.memory_space<vmem>>, vector<1x3x128xf32>
    %6 = vector.shape_cast %5 : vector<1x3x128xf32> to vector<3x128xf32>
    %c0_6 = arith.constant 0 : index
    %c0_7 = arith.constant 0 : index
    %7 = vector.load %arg4[%c0_6, %c0_7] : memref<27x32xf32, #tpu.memory_space<vmem>>, vector<27x32xf32>
    %cst = arith.constant dense<0.000000e+00> : vector<27x128xf32>
    %8 = tpu.matmul %7, %4, %cst {dimension_numbers = #tpu.dot_dimension_numbers<[1], [0], [0], [1], [0, 0, 1, 1], [], []>, precision = #tpu.contract_precision<fp32>} : vector<27x32xf32>, vector<32x128xf32>, vector<27x128xf32> -> vector<27x128xf32>
    %c0_8 = arith.constant 0 : index
    %c0_9 = arith.constant 0 : index
    %9 = vector.load %arg6[%c0_8, %c0_9] : memref<24x1xf32, #tpu.memory_space<vmem>>, vector<24x1xf32>
    %10 = vector.extract_strided_slice %8 {offsets = [0, 0], sizes = [24, 128], strides = [1, 1]} : vector<27x128xf32> to vector<24x128xf32>
    %11 = vector.broadcast %9 : vector<24x1xf32> to vector<24x128xf32>
    %12 = arith.subf %11, %10 : vector<24x128xf32>
    %13 = vector.extract_strided_slice %8 {offsets = [24, 0], sizes = [3, 128], strides = [1, 1]} : vector<27x128xf32> to vector<3x128xf32>
    %c0_10 = arith.constant 0 : index
    %c0_11 = arith.constant 0 : index
    %14 = vector.load %arg7[%c0_10, %c0_11] : memref<3x1xf32, #tpu.memory_space<vmem>>, vector<3x1xf32>
    %15 = vector.broadcast %14 : vector<3x1xf32> to vector<3x128xf32>
    %16 = arith.addf %13, %15 : vector<3x128xf32>
    %cst_12 = arith.constant dense<0x7F800000> : vector<128xf32>
    %17 = vector.multi_reduction <minimumf>, %12, %cst_12 [0] : vector<24x128xf32> to vector<128xf32>
    %18 = vector.shape_cast %17 : vector<128xf32> to vector<1x128xf32>
    %19 = tpu.iota {dimensions = array<i32: 0>} : vector<24x128xi32>
    %20 = arith.sitofp %19 : vector<24x128xi32> to vector<24x128xf32>
    %21 = vector.broadcast %18 : vector<1x128xf32> to vector<24x128xf32>
    %22 = arith.cmpf oeq, %12, %21 : vector<24x128xf32>
    %cst_13 = arith.constant 2.400000e+01 : f32
    %23 = vector.broadcast %cst_13 : f32 to vector<24x128xf32>
    %24 = arith.select %22, %20, %23 : vector<24x128xi1>, vector<24x128xf32>
    %cst_14 = arith.constant dense<0x7F800000> : vector<128xf32>
    %25 = vector.multi_reduction <minimumf>, %24, %cst_14 [0] : vector<24x128xf32> to vector<128xf32>
    %26 = vector.shape_cast %25 : vector<128xf32> to vector<1x128xf32>
    %27 = arith.fptosi %26 : vector<1x128xf32> to vector<1x128xi32>
    %c0_15 = arith.constant 0 : index
    %c0_16 = arith.constant 0 : index
    %c0_17 = arith.constant 0 : index
    %28 = vector.load %arg10[%c0_15, %c0_16, %c0_17] : memref<1x1x128xi32, #tpu.memory_space<vmem>>, vector<1x1x128xi32>
    %29 = vector.shape_cast %28 : vector<1x1x128xi32> to vector<1x128xi32>
    %30 = vector.shape_cast %27 : vector<1x128xi32> to vector<1x1x128xi32>
    tpu.vector_store %arg10[%c0_15, %c0_16, %c0_17], %30 {strides = array<i32>} : memref<1x1x128xi32, #tpu.memory_space<vmem>>, vector<1x1x128xi32>,
    %31 = vector.broadcast %26 : vector<1x128xf32> to vector<24x128xf32>
    %32 = arith.cmpf oeq, %20, %31 : vector<24x128xf32>
    %33 = arith.extui %32 : vector<24x128xi1> to vector<24x128xi32>
    %34 = arith.sitofp %33 : vector<24x128xi32> to vector<24x128xf32>
    %c0_18 = arith.constant 0 : index
    %c0_19 = arith.constant 0 : index
    %35 = vector.load %arg5[%c0_18, %c0_19] : memref<32x24xf32, #tpu.memory_space<vmem>>, vector<32x24xf32>
    %cst_20 = arith.constant dense<0.000000e+00> : vector<32x128xf32>
    %36 = tpu.matmul %35, %34, %cst_20 {dimension_numbers = #tpu.dot_dimension_numbers<[1], [0], [0], [1], [0, 0, 1, 1], [], []>, precision = #tpu.contract_precision<fp32>} : vector<32x24xf32>, vector<24x128xf32>, vector<32x128xf32> -> vector<32x128xf32>
    %c0_21 = arith.constant 0 : index
    %c0_22 = arith.constant 0 : index
    %c0_23 = arith.constant 0 : index
    %37 = vector.load %arg9[%c0_21, %c0_22, %c0_23] : memref<1x32x128xf32, #tpu.memory_space<vmem>>, vector<1x32x128xf32>
    %38 = vector.shape_cast %37 : vector<1x32x128xf32> to vector<32x128xf32>
    %39 = vector.shape_cast %36 : vector<32x128xf32> to vector<1x32x128xf32>
    tpu.vector_store %arg9[%c0_21, %c0_22, %c0_23], %39 {strides = array<i32>} : memref<1x32x128xf32, #tpu.memory_space<vmem>>, vector<1x32x128xf32>,
    %40 = arith.mulf %4, %4 : vector<32x128xf32>
    %cst_24 = arith.constant dense<0.000000e+00> : vector<128xf32>
    %41 = vector.multi_reduction <add>, %40, %cst_24 [0] : vector<32x128xf32> to vector<128xf32>
    %42 = vector.shape_cast %41 : vector<128xf32> to vector<1x128xf32>
    %c0_25 = arith.constant 0 : index
    %c0_26 = arith.constant 0 : index
    %43 = vector.load %arg13[%c0_25, %c0_26] : memref<1x128xf32, #tpu.memory_space<vmem>>, vector<1x128xf32>
    %44 = arith.addf %42, %18 : vector<1x128xf32>
    %45 = arith.addf %43, %44 : vector<1x128xf32>
    %c0_27 = arith.constant 0 : index
    %c0_28 = arith.constant 0 : index
    %46 = vector.load %arg13[%c0_27, %c0_28] : memref<1x128xf32, #tpu.memory_space<vmem>>, vector<1x128xf32>
    tpu.vector_store %arg13[%c0_27, %c0_28], %45 {strides = array<i32>} : memref<1x128xf32, #tpu.memory_space<vmem>>, vector<1x128xf32>,
    %47 = arith.mulf %16, %6 : vector<3x128xf32>
    %cst_29 = arith.constant dense<0.000000e+00> : vector<128xf32>
    %48 = vector.multi_reduction <add>, %47, %cst_29 [0] : vector<3x128xf32> to vector<128xf32>
    %49 = vector.shape_cast %48 : vector<128xf32> to vector<1x128xf32>
    %50 = arith.mulf %16, %16 : vector<3x128xf32>
    %cst_30 = arith.constant dense<0.000000e+00> : vector<128xf32>
    %51 = vector.multi_reduction <add>, %50, %cst_30 [0] : vector<3x128xf32> to vector<128xf32>
    %52 = vector.shape_cast %51 : vector<128xf32> to vector<1x128xf32>
    %53 = arith.mulf %6, %6 : vector<3x128xf32>
    %cst_31 = arith.constant dense<0.000000e+00> : vector<128xf32>
    %54 = vector.multi_reduction <add>, %53, %cst_31 [0] : vector<3x128xf32> to vector<128xf32>
    %55 = vector.shape_cast %54 : vector<128xf32> to vector<1x128xf32>
    %56 = arith.mulf %52, %55 : vector<1x128xf32>
    %cst_32 = arith.constant 1.000000e-16 : f32
    %57 = vector.broadcast %cst_32 : f32 to vector<1x128xf32>
    %58 = arith.maximumf %56, %57 : vector<1x128xf32>
    %59 = math.rsqrt %58 : vector<1x128xf32>
    %60 = arith.mulf %49, %59 : vector<1x128xf32>
    %61 = tpu.iota {dimensions = array<i32: 1>} : vector<1x128xi32>
    %c0_i32_33 = arith.constant 0 : i32
    %62 = vector.broadcast %c0_i32_33 : i32 to vector<1x128xi32>
    %63 = arith.cmpi eq, %61, %62 : vector<1x128xi32>
    %c0_34 = arith.constant 0 : index
    %c0_35 = arith.constant 0 : index
    %64 = vector.load %arg15[%c0_34, %c0_35] : memref<1x1xf32, #tpu.memory_space<vmem>>, vector<1x1xf32>
    %c1_i32 = arith.constant 1 : i32
    %65 = tpu.dynamic_rotate %60 by %c1_i32 dim 1 : vector<1x128xf32>, i32 -> vector<1x128xf32>
    %66 = vector.shape_cast %64 : vector<1x1xf32> to vector<1x1xf32>
    %67 = vector.broadcast %66 : vector<1x1xf32> to vector<1x128xf32>
    %68 = arith.select %63, %67, %65 : vector<1x128xi1>, vector<1x128xf32>
    %c0_i32_36 = arith.constant 0 : i32
    %69 = vector.broadcast %c0_i32_36 : i32 to vector<1x128xi32>
    %70 = arith.cmpi eq, %61, %69 : vector<1x128xi32>
    %c0_37 = arith.constant 0 : index
    %c0_38 = arith.constant 0 : index
    %71 = vector.load %arg16[%c0_37, %c0_38] : memref<1x1xf32, #tpu.memory_space<vmem>>, vector<1x1xf32>
    %c1_i32_39 = arith.constant 1 : i32
    %72 = tpu.dynamic_rotate %26 by %c1_i32_39 dim 1 : vector<1x128xf32>, i32 -> vector<1x128xf32>
    %73 = vector.shape_cast %71 : vector<1x1xf32> to vector<1x1xf32>
    %74 = vector.broadcast %73 : vector<1x1xf32> to vector<1x128xf32>
    %75 = arith.select %70, %74, %72 : vector<1x128xi1>, vector<1x128xf32>
    %76 = arith.subf %60, %68 : vector<1x128xf32>
    %77 = math.absf %76 : vector<1x128xf32>
    %78 = arith.cmpf one, %26, %75 : vector<1x128xf32>
    %79 = arith.extui %78 : vector<1x128xi1> to vector<1x128xi32>
    %80 = arith.sitofp %79 : vector<1x128xi32> to vector<1x128xf32>
    %81 = arith.mulf %77, %80 : vector<1x128xf32>
    %c0_i32_40 = arith.constant 0 : i32
    %82 = vector.broadcast %c0_i32_40 : i32 to vector<1x128xi32>
    %83 = arith.cmpi sgt, %61, %82 : vector<1x128xi32>
    %c0_i32_41 = arith.constant 0 : i32
    %84 = arith.cmpi sgt, %arg2, %c0_i32_41 : i32
    %85 = vector.broadcast %84 : i1 to vector<1x128xi1>
    %86 = arith.ori %83, %85 : vector<1x128xi1>
    %c0_42 = arith.constant 0 : index
    %c0_43 = arith.constant 0 : index
    %87 = vector.load %arg14[%c0_42, %c0_43] : memref<1x128xf32, #tpu.memory_space<vmem>>, vector<1x128xf32>
    %cst_44 = arith.constant 0.000000e+00 : f32
    %88 = vector.broadcast %cst_44 : f32 to vector<1x128xf32>
    %89 = arith.select %86, %81, %88 : vector<1x128xi1>, vector<1x128xf32>
    %90 = arith.addf %87, %89 : vector<1x128xf32>
    %c0_45 = arith.constant 0 : index
    %c0_46 = arith.constant 0 : index
    %91 = vector.load %arg14[%c0_45, %c0_46] : memref<1x128xf32, #tpu.memory_space<vmem>>, vector<1x128xf32>
    tpu.vector_store %arg14[%c0_45, %c0_46], %90 {strides = array<i32>} : memref<1x128xf32, #tpu.memory_space<vmem>>, vector<1x128xf32>,
    %92 = vector.extract_strided_slice %60 {offsets = [0, 127], sizes = [1, 1], strides = [1, 1]} : vector<1x128xf32> to vector<1x1xf32>
    %c0_47 = arith.constant 0 : index
    %c0_48 = arith.constant 0 : index
    %93 = vector.load %arg15[%c0_47, %c0_48] : memref<1x1xf32, #tpu.memory_space<vmem>>, vector<1x1xf32>
    tpu.vector_store %arg15[%c0_47, %c0_48], %92 {strides = array<i32>} : memref<1x1xf32, #tpu.memory_space<vmem>>, vector<1x1xf32>,
    %94 = vector.extract_strided_slice %26 {offsets = [0, 127], sizes = [1, 1], strides = [1, 1]} : vector<1x128xf32> to vector<1x1xf32>
    %c0_49 = arith.constant 0 : index
    %c0_50 = arith.constant 0 : index
    %95 = vector.load %arg16[%c0_49, %c0_50] : memref<1x1xf32, #tpu.memory_space<vmem>>, vector<1x1xf32>
    tpu.vector_store %arg16[%c0_49, %c0_50], %94 {strides = array<i32>} : memref<1x1xf32, #tpu.memory_space<vmem>>, vector<1x1xf32>,
    %c1_i32_51 = arith.constant 1 : i32
    %96 = arith.cmpi eq, %arg2, %c1_i32_51 : i32
    %97 = arith.extui %96 : i1 to i32
    %c0_i32_52 = arith.constant 0 : i32
    %98 = arith.cmpi ne, %97, %c0_i32_52 : i32
    scf.if %98 {
      %c0_53 = arith.constant 0 : index
      %c0_54 = arith.constant 0 : index
      %99 = vector.load %arg13[%c0_53, %c0_54] : memref<1x128xf32, #tpu.memory_space<vmem>>, vector<1x128xf32>
      %100 = vector.shape_cast %99 : vector<1x128xf32> to vector<1x1x128xf32>
      %cst_55 = arith.constant dense<0.000000e+00> : vector<1xf32>
      %101 = vector.multi_reduction <add>, %100, %cst_55 [1, 2] : vector<1x1x128xf32> to vector<1xf32>
      %102 = vector.shape_cast %101 : vector<1xf32> to vector<1x1x1xf32>
      %103 = vector.extract %102[0, 0, 0] : f32 from vector<1x1x1xf32>
      %104 = vector.broadcast %103 : f32 to vector<1x1xf32>
      %c0_56 = arith.constant 0 : index
      %c0_57 = arith.constant 0 : index
      %c0_58 = arith.constant 0 : index
      %105 = vector.load %arg11[%c0_56, %c0_57, %c0_58] : memref<1x1x1xf32, #tpu.memory_space<vmem>>, vector<1x1x1xf32>
      %106 = vector.shape_cast %105 : vector<1x1x1xf32> to vector<1x1xf32>
      %107 = vector.shape_cast %104 : vector<1x1xf32> to vector<1x1x1xf32>
      tpu.vector_store %arg11[%c0_56, %c0_57, %c0_58], %107 {strides = array<i32>} : memref<1x1x1xf32, #tpu.memory_space<vmem>>, vector<1x1x1xf32>,
      %c0_59 = arith.constant 0 : index
      %c0_60 = arith.constant 0 : index
      %108 = vector.load %arg14[%c0_59, %c0_60] : memref<1x128xf32, #tpu.memory_space<vmem>>, vector<1x128xf32>
      %109 = vector.shape_cast %108 : vector<1x128xf32> to vector<1x1x128xf32>
      %cst_61 = arith.constant dense<0.000000e+00> : vector<1xf32>
      %110 = vector.multi_reduction <add>, %109, %cst_61 [1, 2] : vector<1x1x128xf32> to vector<1xf32>
      %111 = vector.shape_cast %110 : vector<1xf32> to vector<1x1x1xf32>
      %112 = vector.extract %111[0, 0, 0] : f32 from vector<1x1x1xf32>
      %113 = vector.broadcast %112 : f32 to vector<1x1xf32>
      %c0_62 = arith.constant 0 : index
      %c0_63 = arith.constant 0 : index
      %c0_64 = arith.constant 0 : index
      %114 = vector.load %arg12[%c0_62, %c0_63, %c0_64] : memref<1x1x1xf32, #tpu.memory_space<vmem>>, vector<1x1x1xf32>
      %115 = vector.shape_cast %114 : vector<1x1x1xf32> to vector<1x1xf32>
      %116 = vector.shape_cast %113 : vector<1x1xf32> to vector<1x1x1xf32>
      tpu.vector_store %arg12[%c0_62, %c0_63, %c0_64], %116 {strides = array<i32>} : memref<1x1x1xf32, #tpu.memory_space<vmem>>, vector<1x1x1xf32>,
    } else {
    }
    return
  }
  func.func @transform_0(%arg0: i32, %arg1: i32, %arg2: i32) -> (i32, i32, i32) {
    %c2_i32 = arith.constant 2 : i32
    %0 = arith.muli %arg1, %c2_i32 : i32
    %1 = arith.addi %0, %arg2 : i32
    %c0_i32 = arith.constant 0 : i32
    %c0_i32_0 = arith.constant 0 : i32
    return %arg0, %c0_i32, %1 : i32, i32, i32
  }
  func.func @transform_1(%arg0: i32, %arg1: i32, %arg2: i32) -> (i32, i32) {
    %c0_i32 = arith.constant 0 : i32
    %c0_i32_0 = arith.constant 0 : i32
    %c0_i32_1 = arith.constant 0 : i32
    return %c0_i32, %c0_i32_0 : i32, i32
  }
  func.func @transform_2(%arg0: i32, %arg1: i32, %arg2: i32) -> (i32, i32) {
    %c0_i32 = arith.constant 0 : i32
    %c0_i32_0 = arith.constant 0 : i32
    %c0_i32_1 = arith.constant 0 : i32
    return %c0_i32, %c0_i32_0 : i32, i32
  }
  func.func @transform_3(%arg0: i32, %arg1: i32, %arg2: i32) -> (i32, i32) {
    %c0_i32 = arith.constant 0 : i32
    %c0_i32_0 = arith.constant 0 : i32
    %c0_i32_1 = arith.constant 0 : i32
    return %c0_i32, %c0_i32_0 : i32, i32
  }
  func.func @transform_4(%arg0: i32, %arg1: i32, %arg2: i32) -> (i32, i32) {
    %c0_i32 = arith.constant 0 : i32
    %c0_i32_0 = arith.constant 0 : i32
    %c0_i32_1 = arith.constant 0 : i32
    return %c0_i32, %c0_i32_0 : i32, i32
  }
  func.func @transform_5(%arg0: i32, %arg1: i32, %arg2: i32) -> (i32, i32, i32) {
    %c2_i32 = arith.constant 2 : i32
    %0 = arith.muli %arg1, %c2_i32 : i32
    %1 = arith.addi %0, %arg2 : i32
    %c0_i32 = arith.constant 0 : i32
    %c0_i32_0 = arith.constant 0 : i32
    return %arg0, %c0_i32, %1 : i32, i32, i32
  }
  func.func @transform_6(%arg0: i32, %arg1: i32, %arg2: i32) -> (i32, i32, i32) {
    %c2_i32 = arith.constant 2 : i32
    %0 = arith.muli %arg1, %c2_i32 : i32
    %1 = arith.addi %0, %arg2 : i32
    %c0_i32 = arith.constant 0 : i32
    %c0_i32_0 = arith.constant 0 : i32
    return %arg0, %c0_i32, %1 : i32, i32, i32
  }
  func.func @transform_7(%arg0: i32, %arg1: i32, %arg2: i32) -> (i32, i32, i32) {
    %c2_i32 = arith.constant 2 : i32
    %0 = arith.muli %arg1, %c2_i32 : i32
    %1 = arith.addi %0, %arg2 : i32
    %c0_i32 = arith.constant 0 : i32
    %c0_i32_0 = arith.constant 0 : i32
    return %arg0, %c0_i32, %1 : i32, i32, i32
  }
  func.func @transform_8(%arg0: i32, %arg1: i32, %arg2: i32) -> (i32, i32, i32) {
    %c1_i32 = arith.constant 1 : i32
    %0 = arith.muli %arg0, %c1_i32 : i32
    %1 = arith.addi %0, %arg1 : i32
    %c0_i32 = arith.constant 0 : i32
    %c0_i32_0 = arith.constant 0 : i32
    %c0_i32_1 = arith.constant 0 : i32
    return %1, %c0_i32, %c0_i32_0 : i32, i32, i32
  }
  func.func @transform_9(%arg0: i32, %arg1: i32, %arg2: i32) -> (i32, i32, i32) {
    %c1_i32 = arith.constant 1 : i32
    %0 = arith.muli %arg0, %c1_i32 : i32
    %1 = arith.addi %0, %arg1 : i32
    %c0_i32 = arith.constant 0 : i32
    %c0_i32_0 = arith.constant 0 : i32
    %c0_i32_1 = arith.constant 0 : i32
    return %1, %c0_i32, %c0_i32_0 : i32, i32, i32
  }
}

</mosaic_0001>

<bundles_post_ra>
// kernel: tpu_custom_call.1
= control target key start
LH: loop header
LB: loop body
LE: loop exit
PB: predicated region body
PF: predicated region fallthrough
CT: control target
= control target key end

     0   :  { %s3389_s0 = inlined_call_operand.hbm [shape: f32[2,32,256], index: 0, kind: input, shape index: {}]   ;;  %s3390_s1 = inlined_call_operand.vmem [shape: f32[27,32], index: 1, kind: input, shape index: {}]   ;;  %s3391_s2 = inlined_call_operand.vmem [shape: f32[32,24], index: 2, kind: input, shape index: {}]   ;;  %s3392_s3 = inlined_call_operand.vmem [shape: f32[24,1], index: 3, kind: input, shape index: {}]   ;;  %s3393_s4 = inlined_call_operand.vmem [shape: f32[3,1], index: 4, kind: input, shape index: {}]   ;;  %s3394_s5 = inlined_call_operand.vmem [shape: f32[2,3,256], index: 5, kind: input, shape index: {}]   ;;  %s3395_s6 = inlined_call_operand.hbm [shape: f32[2,32,256], index: 6, kind: output, shape index: {0}]   ;;  %s3396_s7 = inlined_call_operand.hbm [shape: s32[2,1,256], index: 7, kind: output, shape index: {1}]   ;;  %s3397_s8 = inlined_call_operand.vmem [shape: f32[2,1,1], index: 8, kind: output, shape index: {2}]   ;;  %s3398_s9 = inlined_call_operand.vmem [shape: f32[2,1,1], index: 9, kind: output, shape index: {3}]  }
   0x1   :  { %3410 = sst [smem:[#allocation21_spill]] %s3389_s0 }
   0x2   :  { %3411 = sst [smem:[#allocation22_spill]] %s3390_s1 }
   0x3   :  { %3412 = sst [smem:[#allocation23_spill]] %s3391_s2 }
   0x4   :  { %3413 = sst [smem:[#allocation24_spill]] %s3392_s3 }
   0x5   :  { %3414 = sst [smem:[#allocation25_spill]] %s3393_s4 }
   0x6   :  { %3415 = sst [smem:[#allocation26_spill]] %s3394_s5 }
   0x7   :  { %3416 = sst [smem:[#allocation27_spill]] %s3395_s6 }
   0x8   :  { %3417 = sst [smem:[#allocation28_spill]] %s3396_s7 }
   0x9   :  { %15 = vsyncpa [#allocation7], 0 }
   0xa   :  { %17 = vsyncpa [#allocation7 + $0x1], 0 }
   0xb   :  { %18 = vsyncpa [#allocation8], 0 }
   0xc   :  { %20 = vsyncpa [#allocation8 + $0x1], 0 }
   0xd   :  { %21 = vsyncpa [#allocation11], 0 }
   0xe   :  { %23 = vsyncpa [#allocation11 + $0x1], 0  ;;  %s2789_s30 = smov 0   ;;  %s2791_s10 = smov 0  }
   0xf   :  { %s2793_s11 = smov 0   ;;  %s2795_s12 = smov 0  }
  0x10   :  { %s2797_s13 = smov 0   ;;  %s2799_s14 = smov 0  }
  0x11   :  { %s2801_s15 = smov 0   ;;  %s2803_s16 = smov 0  }
  0x12 LB: > { %3418 = sst [smem:[#allocation15_spill]] %s2695_s30  ;;  %s2185_s17 = sadd.s32 4294967295, %s2723_s16   ;;  %s2723_s16 = sphi %s2803_s16, %s29_s16   ;;  %s2719_s15 = sphi %s2801_s15, %s3448_s15   ;;  %s2715_s14 = sphi %s2799_s14, %s3447_s14   ;;  %s2711_s13 = sphi %s2797_s13, %s3446_s13   ;;  %s2707_s12 = sphi %s2795_s12, %s3445_s12   ;;  %s2703_s11 = sphi %s2793_s11, %s3451_s11   ;;  %s2699_s10 = sphi %s2791_s10, %s3450_s10   ;;  %s2695_s30 = sphi %s2789_s30, %s3449_s30  }
  0x13   : > { %3419 = sst [smem:[#allocation16_spill]] %s2715_s14  ;;  %s2186_s18 = sadd.s32 4294967294, %s2723_s16  }
  0x14   : > { %3420 = sst [smem:[#allocation17_spill]] %s2719_s15  ;;  %s41_s19 = sadd.s32 1, %s2715_s14 }
  0x15   : > { %s48_s20 = sadd.s32 1, %s2719_s15  ;;  %p42_p0 = scmp.ge.s32.totalorder %s41_s19, 2 }
  0x16   : > { %s61_s21 = sadd.s32 1, %s2703_s11  ;;  %p68_p1 = scmp.ne.s32.totalorder %s2703_s11, %s2699_s10 }
  0x17   : > { %p69_p2 = scmp.eq.s32.totalorder %s2723_s16, 0  ;;  %s3453_s19 = smov (%p42_p0, %s41_s19), 0 }
  0x18   : > { %3421 = sst [smem:[#allocation18_spill]] %s3453_s19  ;;  %s3455_s20 = smov (!%p42_p0, %s48_s20), %s2719_s15 }
  0x19   : > { %s57_s22 = ssub.s32 %s2715_s14, %s3453_s19  ;;  %p2842_p3 = por %p69_p2, %p68_p1 }
  0x1a   : > { %p50_p4 = scmp.ge.s32.totalorder %s3455_s20, 2  ;;  %p74_p5 = scmp.ne.s32.totalorder %s2699_s10, %s2695_s30 }
  0x1b   : > { %p75_p6 = scmp.eq.s32.totalorder %s2185_s17, 0  ;;  %p220_p7 = scmp.eq.s32.totalorder %s2185_s17, 3 }
  0x1c   : > { %s3457_s20 = smov (%p50_p4, %s3455_s20), 0  ;;  %p226_p10 = scmp.eq.s32.totalorder %s2186_s18, 3 }
  0x1d   : > { %3423 = sst [smem:[#allocation19_spill]] %s3457_s20  ;;  %p2850_p8 = por %p75_p6, %p74_p5 }
  0x1e   : > { %p2854_p9 = por %p220_p7, %p68_p1  ;;  %s56_s26 = ssub.s32 %s2719_s15, %s3457_s20 }
  0x1f   : > { %s58_s27 = sor.u32 %s57_s22, %s56_s26  ;;  %p2860_p12 = por %p226_p10, %p74_p5 }
  0x20   : > { %s3425_s25 = scalar_select %p2854_p9, 1, 0 }
  0x21   : > { %p59_p11 = scmp.eq.s32.totalorder %s58_s27, 0  ;;  %p2488_p13 = scmp.lt.s32.totalorder %s2723_s16, 4 }
  0x22   : > { %3426 = sst [smem:[#allocation20_spill]] %s3425_s25  ;;  %s346_s29 = sand.u32 1, %s2703_s11  }
  0x23   : > { %s2867_s17 = scalar_select %p59_p11, %s2703_s11, %s61_s21  }
  0x24   : > { %s2189_s19 = sshll.u32 %s346_s29, 5  ;;  %s2190_s30 = sshll.u32 %s2719_s15, 3 }
  0x25   : > { %s357_s7 = sadd.s32 %s2715_s14, %s2190_s30  ;;  %s350_s6 = scalar_lea.vmem [#allocation6], %s2189_s19 }
  0x26   : > { %s360_s2 = sshll.u32 %s350_s6, 4  ;;  %s2191_s4 = sshll.u32 %s357_s7, 7  ;;  %s361_s2 = int_to_ptr.vmem [resolvable:$true] %s360_s2 }
  0x27   : > { %s3428_s0 = sld [smem:[#allocation21_spill]]  ;;  %p2876_p0 = pnand %p2488_p13, %p2842_p3 }
  0x28   : > { %s347_s26 = scalar_lea.sflag [#allocation7], %s346_s29  ;;  %s2582_s21 = scalar_lea.vmem %s361_s2, 512 }
  0x29   : > { %p2571_p1 = pneg %p2876_p0  ;;  %p2583_p2 = scmp.ne.s32.totalorder %s361_s2, %s2582_s21 }
  0x2a   : > { %s2725_s6 = smov [#allocation6]  }
  0x2b   : > { %p2585_p4 = pnand %p2583_p2, %p2571_p1  ;;  %s2587_s7 = sshll.u32 %s2725_s6, 4  ;;  %s2588_s7 = int_to_ptr.vmem [resolvable:$false] %s2587_s7 }
  0x2c   : > { %s2589_s30 = scalar_lea.vmem %s2588_s7, 1024  ;;  %p2590_p6 = scmp.lt.s32.totalorder %s361_s2, %s2588_s7 }
  0x2d   : > { %s359_s18 = scalar_lea.hbm %s3428_s0, %s2191_s4  ;;  %p2586_p5 = pneg %p2585_p4 }
  0x2e   : > { %p2591_p7 = scmp.lt.s32.totalorder %s2589_s30, %s2582_s21 }
  0x30   : > { %p2592_p10 = por %p2591_p7, %p2590_p6 }
  0x32   : > { %p2593_p11 = pnand %p2592_p10, %p2586_p5 }
  0x34   : > { %2596 = shalt.err (!%p2593_p11)
}
  0x35   : > { %s2726_s4 = smov 256   ;;  %s2727_s19 = smov 128  }
  0x36   : > { %s2728_s20 = smov 8   ;;  %p2192_p3 = scmp.ge.s32.totalorder %s2723_s16, 1 }
  0x37   : > { %2480 = dma.hbm_to_vmem [thread:$0]  (!%p2876_p0), %s359_s18, 512, %s361_s2, %s347_s26, %s2726_s4, %s2727_s19, %s2728_s20  }
  0x38   : > { %p383_p13 = scmp.lt.s32.totalorder %s2723_s16, 5 }
  0x3a   : > { %p384_p1 = pnand %p2192_p3, %p383_p13 }
  0x3b   : > { %s2887_s23 = sand.u32 (!%p384_p1), 1, %s2699_s10  }
  0x3c   : > { %387 = sbr.rel (%p384_p1) target bundleno = 857 (0x359), region = 44  ;;  %s2193_s25 = sshll.u32 (!%p384_p1), %s2887_s23, 5 }
  0x3d   : > { %s390_s27 = scalar_lea.sflag (!%p384_p1), [#allocation7], %s2887_s23  ;;  %s2891_s29 = scalar_lea.vmem (!%p384_p1), [#allocation6], %s2193_s25 }
  0x41   : > { %2682 = dma.done.wait (%p2850_p8), %s390_s27, 512  }
  0x42   : > { %2684 = vsyncadd (%p2850_p8), %s390_s27, 4294966784  ;;  %p454_p0 = scmp.lt.s32.totalorder %s2711_s13, 1  ;;  %p456_p2 = scmp.lt.s32.totalorder %s2707_s12, 1 }
  0x43   : > { %s3430_s5 = sld [smem:[#allocation26_spill]]  ;;  %s2917_s15 = scalar_lea.vmem [#allocation9], %s2193_s25 }
  0x44   : > { %s2900_s2 = scalar_select %p454_p0, %s2711_s13, 1 }
  0x45   : > { %s457_s18 = scalar_select %p456_p2, %s2707_s12, 1 }
  0x46   : > { %s2195_s22 = sshll.u32 %s2900_s2, 1  ;;  %s471_s6 = scalar_lea.vmem %s3397_s8, %s2900_s2 }
  0x47   : > { %s459_s24 = sadd.s32 %s2195_s22, %s457_s18  ;;  %s476_s4 = scalar_lea.vmem %s3398_s9, %s2900_s2 }
  0x48   : > { %s2196_s19 = sshll.u32 %s459_s24, 2  ;;  %s437_s14 = scalar_lea.vmem [#allocation10], %s2887_s23 }
  0x49   : > { %s2915_s0 = scalar_lea.vmem %s3430_s5, %s2196_s19  ;;  %p2197_p8 = scmp.ne.s32.totalorder %s2707_s12, 0 }
  0x4b   : > { %481 = sbr.rel (%p2197_p8) target bundleno = 83 (0x53), region = 52 }
  0x50   : > { %vm484_vm0 = vcmask 0   ;;  %v2729_v0 = vmov 0.0  }
  0x51   : > { %482 = vst [vmem:[#allocation2] sm:$0x1] %v2729_v0  ;;  %483 = vst [vmem:[#allocation3] sm:$0x1] %v2729_v0 }
  0x52   : > { %485 = vst.msk [vmem:[#allocation4] sm:$0x1] %vm484_vm0, %v2729_v0  ;;  %486 = vst.msk [vmem:[#allocation5] sm:$0x1] %vm484_vm0, %v2729_v0 }
  0x53 PF: > { %v2922_v1 = vld [vmem:[%s2891_s29 + $0x18] sm:$0xff]  ;;  %v2925_v2 = vld [vmem:[%s2891_s29 + $0x10] sm:$0xff]  ;;  %v2928_v3 = vld [vmem:[%s2891_s29 + $0x8] sm:$0xff]  ;;  %vm496_vm1 = vcmask 261120   ;;  %s3431_s1 = sld [smem:[#allocation22_spill]]  ;;  %v2730_v10 = vmov 0  }
  0x54   : > { %v2931_v4 = vand.u32 4294901760, %v2922_v1  ;;  %v2934_v5 = vand.u32 4294901760, %v2925_v2  ;;  %v2937_v6 = vand.u32 4294901760, %v2928_v3  ;;  %v2940_v7 = vld [vmem:[%s2891_s29] sm:$0xff]  ;;  %2565 = vset.pattern.permute.xlu0 %v2730_v10  ;;  %2566 = vset.pattern.permute.xlu1 %v2730_v10  ;;  %s3432_s3 = sld [smem:[#allocation24_spill]]  ;;  %v1814_v60 = vmul.f32 %v2928_v3, %v2928_v3  ;;  %s2731_s18 = smov 1  }
  0x55   : > { %v2949_v11 = vand.u32 4294901760, %v2940_v7  ;;  %s3433_s21 = sld [smem:[#allocation25_spill]]  ;;  %v1813_v61 = vmul.f32 %v2940_v7, %v2940_v7  ;;  %v1815_v62 = vmul.f32 %v2925_v2, %v2925_v2  ;;  %vm1195_vm2 = vcmask 195584   ;;  %p1895_p4 = scmp.gt.s32.totalorder %s2707_s12, 0 }
  0x56   : > { %2309 = vmatprep.subr.mxu0 %v2931_v4  ;;  %v644_v16 = vsub.f32 %v2922_v1, %v2931_v4  ;;  %v2969_v19 = vsub.f32 %v2925_v2, %v2934_v5  ;;  %v2979_v22 = vsub.f32 %v2928_v3, %v2937_v6  ;;  %s3434_s7 = sld [smem:[#allocation23_spill]]  ;;  %vm1831_vm3 = vcmask 1042432   ;;  %p2211_p5 = scmp.ne.s32.totalorder %s2707_s12, 1 }
  0x57   : > { %2310 = vmatpush3.msra.mxu0 %v2931_v4  ;;  %v665_v34 = vsub.f32 %v2940_v7, %v2949_v11  ;;  %v1817_v63 = vadd.f32 %v1814_v60, %v1813_v61  ;;  %s1896_s22 = scalar_select %p1895_p4, 1, 0  ;;  %vm1908_vm11 = vcmask 0  }
  0x58   : > { %2311 = vmatprep.subr.mxu0 %v2934_v5  ;;  %v2987_v26 = vand.u32 4294901760, %v644_v16  ;;  %v2993_v28 = vand.u32 4294901760, %v2969_v19  ;;  %v3006_v32 = vand.u32 4294901760, %v2979_v22 }
  0x59   : > { %v492_v8 = vld [vmem:[%s3431_s1] sm:$0xff]  ;;  %v493_v9 = vld [vmem:[%s3431_s1 + $0x8] sm:$0xff]  ;;  %v494_v13 = vld [vmem:[%s3431_s1 + $0x10] sm:$0xff]  ;;  %2312 = vmatpush3.msra.mxu0 %v2934_v5  ;;  %v3027_v42 = vand.u32 4294901760, %v665_v34  ;;  %v1818_v0 = vadd.f32 %v1817_v63, %v1815_v62 }
  0x5a   : > { %v498_v12 = vsel %vm496_vm1, %v492_v8, 0  ;;  %v495_v14 = vld [vmem:[%s3431_s1 + $0x18] sm:$0x7]  ;;  %v1123_v15 = vld [vmem:[%s3432_s3] sm:$0xff]  ;;  %v501_v18 = vsel %vm496_vm1, %v493_v9, 0  ;;  %v1125_v20 = vld [vmem:[%s3432_s3 + $0x10] sm:$0xff]  ;;  %2313 = vmatprep.subr.mxu0 %v2937_v6  ;;  %v646_v35 = vsub.f32 %v644_v16, %v2987_v26  ;;  %v653_v37 = vsub.f32 %v2969_v19, %v2993_v28 }
  0x5b   : > { %v2964_v17 = vand.u32 4294901760, %v498_v12  ;;  %1128 = vperm.xlu0 %2565, %v1123_v15   ;;  %v2975_v21 = vand.u32 4294901760, %v501_v18  ;;  %v504_v23 = vsel %vm496_vm1, %v494_v13, 0  ;;  %v507_v24 = vsel %vm496_vm1, %v495_v14, 0  ;;  %v1124_v25 = vld [vmem:[%s3432_s3 + $0x8] sm:$0xff]  ;;  %1138 = vperm.xlu1 %2566, %v1125_v20  }
  0x5c   : > { %v2995_v29 = vand.u32 4294901760, %v504_v23  ;;  %v1144_v30 = vld [vmem:[%s3433_s21] sm:$0x7]  ;;  %v3008_v33 = vand.u32 4294901760, %v507_v24  ;;  %2314 = vmatpush3.msra.mxu0 %v2937_v6  ;;  %v660_v40 = vsub.f32 %v2979_v22, %v3006_v32  ;;  %v647_v43 = vand.u32 4294901760, %v646_v35 }
  0x5d   : > { %v2990_v27 = vsub.f32 %v498_v12, %v2964_v17  ;;  %2331 = vmatprep.mubr.f32.mxu1 %v2964_v17  ;;  %v3003_v31 = vsub.f32 %v501_v18, %v2975_v21  ;;  %2315 = vmatprep.subr.mxu0 %v2949_v11  ;;  %v654_v45 = vand.u32 4294901760, %v653_v37  ;;  %v1862_v47 = vld [vmem:[#allocation4] sm:$0x1]  ;;  %v667_v50 = vsub.f32 %v665_v34, %v3027_v42  ;;  %v1875_v59 = vld [vmem:[#allocation5] sm:$0x1] }
  0x5e   : > { %v3018_v38 = vsub.f32 %v504_v23, %v2995_v29  ;;  %v3025_v41 = vsub.f32 %v507_v24, %v3008_v33  ;;  %2316 = vmatpush3.msra.mxu0 %v2949_v11  ;;  %2323 = vmatprep.subr.mxu1 %v647_v43  ;;  %v661_v52 = vand.u32 4294901760, %v660_v40  ;;  %v491_v20 = vld [vmem:[%s2915_s0] sm:$0x7] }
  0x5f   : > { %v580_v36 = vand.u32 4294901760, %v2990_v27  ;;  %1133 = vperm.xlu0 %2565, %v1124_v25   ;;  %v590_v39 = vand.u32 4294901760, %v3003_v31  ;;  %1147 = vperm.xlu1 %2566, %v1144_v30   ;;  %v668_v58 = vand.u32 4294901760, %v667_v50 }
  0x60   : > { %v600_v46 = vand.u32 4294901760, %v3018_v38  ;;  %v610_v49 = vand.u32 4294901760, %v3025_v41  ;;  %2337 = vmatprep.subr.mxu0 %v644_v16  ;;  %2324 = vmatpush3.msra.mxu1 %v647_v43 }
  0x61   : > { %v581_v44 = vsub.f32 %v2990_v27, %v580_v36  ;;  %v591_v48 = vsub.f32 %v3003_v31, %v590_v39  ;;  %2325 = vmatprep.subr.mxu1 %v654_v45 }
  0x62   : > { %v601_v53 = vsub.f32 %v3018_v38, %v600_v46  ;;  %v611_v55 = vsub.f32 %v3025_v41, %v610_v49  ;;  %2326 = vmatpush3.msra.mxu1 %v654_v45 }
  0x63   : > { %v582_v51 = vand.u32 4294901760, %v581_v44  ;;  %v592_v54 = vand.u32 4294901760, %v591_v48  ;;  %1867 = vperm.xlu0 %2565, %v1862_v47   ;;  %2327 = vmatprep.subr.mxu1 %v661_v52 }
  0x64   : > { %v602_v56 = vand.u32 4294901760, %v601_v53  ;;  %v612_v57 = vand.u32 4294901760, %v611_v55  ;;  %2328 = vmatpush3.msra.mxu1 %v661_v52  ;;  %1880 = vperm.xlu1 %2566, %v1875_v59  }
  0x65   : > { %2317 = vmatprep.mubr.f32.mxu0 %v582_v51  ;;  %2329 = vmatprep.subr.mxu1 %v668_v58 }
  0x66   : > { %2318 = vmatmul.mubr.f32.vlgmr.msra.gmra.mxu0 %v592_v54  ;;  %2330 = vmatpush3.msra.mxu1 %v668_v58 }
  0x67   : > { %2338 = vmatpush3.msra.mxu0 %v644_v16  ;;  %2320 = vmatprep.mubr.f32.mxu0 %v602_v56 }
  0x68   : > { %2339 = vmatprep.subr.mxu0 %v2969_v19  ;;  %2332 = vmatmul.mubr.f32.vlgmr.msra.gmra.mxu1 %v2975_v21 }
  0x69   : > { %2340 = vmatpush3.msra.mxu0 %v2969_v19  ;;  %2351 = vmatprep.subr.mxu1 %v2931_v4 }
  0x6a   : > { %2321 = vmatmul.mubr.f32.gmra.mxu0 %v612_v57  ;;  %2341 = vmatprep.subr.mxu0 %v2979_v22 }
  0x6b   : > { %2342 = vmatpush3.msra.mxu0 %v2979_v22  ;;  %2345 = vmatprep.mubr.f32.mxu0 %v2990_v27 }
  0x6c   : > { %2343 = vmatprep.subr.mxu0 %v665_v34  ;;  %2352 = vmatpush3.msra.mxu1 %v2931_v4 }
  0x6d   : > { %2344 = vmatpush3.msra.mxu0 %v665_v34  ;;  %2353 = vmatprep.subr.mxu1 %v2934_v5 }
  0x6e   : > { %2346 = vmatmul.mubr.f32.vlgmr.msra.gmra.mxu0 %v3003_v31  ;;  %2365 = vmatprep.subr.mxu0 %v2987_v26 }
  0x6f   : > { %2334 = vmatprep.mubr.f32.mxu1 %v2995_v29  ;;  %2354 = vmatpush3.msra.mxu1 %v2934_v5 }
  0x70   : > { %2366 = vmatpush3.msra.mxu0 %v2987_v26  ;;  %2335 = vmatmul.mubr.f32.gmra.mxu1 %v3008_v33  ;;  %v1847_v26 = vmul.f32 %v491_v20, %v491_v20 }
  0x71   : > { %2355 = vmatprep.subr.mxu1 %v2937_v6  ;;  %2367 = vmatprep.subr.mxu0 %v2993_v28 }
  0x72   : > { %2348 = vmatprep.mubr.f32.mxu0 %v3018_v38  ;;  %2356 = vmatpush3.msra.mxu1 %v2937_v6  ;;  %v1848_v35 = vsel %vm1831_vm3, %v1847_v26, 0.0 }
  0x73   : > { %2368 = vmatpush3.msra.mxu0 %v2993_v28  ;;  %2357 = vmatprep.subr.mxu1 %v2949_v11  ;;  %v1849_v47 = vrot.slane %v1848_v35, 4 }
  0x74   : > { %2349 = vmatmul.mubr.f32.gmra.mxu0 %v3025_v41  ;;  %2369 = vmatprep.subr.mxu0 %v3006_v32 }
  0x75   : > { %2358 = vmatpush3.msra.mxu1 %v2949_v11  ;;  %2359 = vmatprep.mubr.f32.mxu1 %v580_v36  ;;  %v1850_v57 = vadd.f32 %v1849_v47, %v1848_v35  ;;  %v1193_v47 = vld [vmem:[%s3434_s7 + $0x10] sm:$0xff] }
  0x76   : > { %2370 = vmatpush3.msra.mxu0 %v3006_v32  ;;  %2360 = vmatmul.mubr.f32.vlgmr.msra.gmra.mxu1 %v590_v39 }
  0x77   : > { %2371 = vmatprep.subr.mxu0 %v3027_v42  ;;  %2379 = vmatprep.subr.mxu1 %v2931_v4 }
  0x78   : > { %2372 = vmatpush3.msra.mxu0 %v3027_v42  ;;  %2373 = vmatprep.mubr.f32.mxu0 %v2964_v17 }
  0x79   : > { %2380 = vmatpush3.msra.mxu1 %v2931_v4  ;;  %2374 = vmatmul.mubr.f32.vlgmr.msra.gmra.mxu0 %v2975_v21  ;;  %v1191_v4 = vld [vmem:[%s3434_s7] sm:$0xff] }
  0x7a   : > { %2381 = vmatprep.subr.mxu1 %v2934_v5  ;;  %2362 = vmatprep.mubr.f32.mxu1 %v600_v46 }
  0x7b   : > { %2382 = vmatpush3.msra.mxu1 %v2934_v5  ;;  %2376 = vmatprep.mubr.f32.mxu0 %v2995_v29  ;;  %v1197_v5 = vsel %vm1195_vm2, %v1191_v4, 0 }
  0x7c   : > { %2363 = vmatmul.mubr.f32.gmra.mxu1 %v610_v49  ;;  %2383 = vmatprep.subr.mxu1 %v2937_v6 }
  0x7d   : > { %2384 = vmatpush3.msra.mxu1 %v2937_v6  ;;  %2377 = vmatmul.mubr.f32.gmra.mxu0 %v3008_v33  ;;  %v3107_v6 = vand.u32 4294901760, %v1197_v5 }
  0x7e   : > { %2385 = vmatprep.subr.mxu1 %v2949_v11  ;;  %2387 = vmatprep.mubr.f32.mxu1 %v2964_v17 }
  0x7f   : > { %2386 = vmatpush3.msra.mxu1 %v2949_v11  ;;  %v3110_v8 = vsub.f32 %v1197_v5, %v3107_v6 }
  0x80   : > { %2388 = vmatmul.mubr.f32.vlgmr.msra.gmra.mxu1 %v2975_v21 }
  0x81   : > { %2390 = vmatprep.mubr.f32.mxu1 %v2995_v29  ;;  %v1278_v3 = vand.u32 4294901760, %v3110_v8  ;;  %v1816_v29 = vmul.f32 %v2922_v1, %v2922_v1 }
  0x83   : > { %v1279_v2 = vsub.f32 %v3110_v8, %v1278_v3  ;;  %v1819_v39 = vadd.f32 %v1818_v0, %v1816_v29 }
  0x84   : > { %2391 = vmatmul.mubr.f32.gmra.mxu1 %v3008_v33 }
  0x85   : > { %2411 = vmatprep.mubr.f32.mxu1 %v3107_v6  ;;  %v1280_v7 = vand.u32 4294901760, %v1279_v2  ;;  %v1820_v50 = vrot.slane %v1819_v39, 4 }
  0x87   : > { %2399 = vmatprep.mubr.f32.mxu0 %v1280_v7  ;;  %v1821_v62 = vadd.f32 %v1820_v50, %v1819_v39  ;;  %v1851_v7 = vrot.slane %v1850_v57, 2 }
  0xd6   : > { %v1129_v43 = vpop.permute.xlu0 %1128  ;;  %v1139_v45 = vpop.permute.xlu1 %1138 }
  0xda   : > { %v1134_v58 = vpop.permute.xlu0 %1133  ;;  %v1148_v63 = vpop.permute.xlu1 %1147 }
 0x126   : > { %v2319_v9 = vpop.f32.mrf.mxu0 }
 0x128   : > { %v584_v10 = vpop.f32.mrf.mxu0  ;;  %v2333_v13 = vpop.f32.mrf.mxu1 }
 0x129   : > { %v712_v23 = vadd.f32 %v2333_v13, %v2319_v9 }
 0x12a   : > { %v2322_v11 = vpop.f32.mrf.mxu0  ;;  %v705_v14 = vpop.f32.mrf.mxu1 }
 0x12b   : > { %v706_v24 = vadd.f32 %v705_v14, %v584_v10 }
 0x12c   : > { %v604_v12 = vpop.f32.mrf.mxu0 }
 0x12e   : > { %v2347_v15 = vpop.f32.mrf.mxu0 }
 0x12f   : > { %v811_v30 = vadd.f32 %v2347_v15, %v712_v23  ;;  %v1159_v15 = vlaneseq }
 0x130   : > { %v2336_v16 = vpop.f32.mrf.mxu1  ;;  %v803_v17 = vpop.f32.mrf.mxu0 }
 0x131   : > { %v724_v27 = vadd.f32 %v2336_v16, %v2322_v11  ;;  %v804_v31 = vadd.f32 %v803_v17, %v706_v24  ;;  %v1852_v17 = vadd.f32 %v1851_v7, %v1850_v57  ;;  %v3123_v24 = vshrl.u32 %v1159_v15, 7  ;;  %v1194_v57 = vld [vmem:[%s3434_s7 + $0x18] sm:$0xff] }
 0x132   : > { %v717_v18 = vpop.f32.mrf.mxu1 }
 0x133   : > { %v718_v32 = vadd.f32 %v717_v18, %v604_v12  ;;  %v1822_v12 = vrot.slane %v1821_v62, 2  ;;  %v1853_v26 = vrot.slane %v1852_v17, 1  ;;  %v1162_v35 = vadd.s32 16, %v3123_v24 }
 0x134   : > { %v2350_v19 = vpop.f32.mrf.mxu0  ;;  %v1163_v39 = vcvt.s32.f32 %v3123_v24 }
 0x135   : > { %v825_v36 = vadd.f32 %v2350_v19, %v724_v27 }
 0x136   : > { %v817_v21 = vpop.f32.mrf.mxu0  ;;  %v2361_v22 = vpop.f32.mrf.mxu1 }
 0x137   : > { %v910_v37 = vadd.f32 %v2361_v22, %v811_v30  ;;  %v818_v42 = vadd.f32 %v817_v21, %v718_v32  ;;  %v1823_v21 = vadd.f32 %v1822_v12, %v1821_v62  ;;  %v1206_v62 = vsel %vm1195_vm2, %v1194_v57, 0 }
 0x138   : > { %v901_v25 = vpop.f32.mrf.mxu1 }
 0x139   : > { %v2375_v28 = vpop.f32.mrf.mxu0  ;;  %v902_v38 = vadd.f32 %v901_v25, %v804_v31  ;;  %v1824_v29 = vrot.slane %v1823_v21, 1  ;;  %v3127_v31 = vadd.s32 8, %v3123_v24 }
 0x13a   : > { %v1015_v1 = vadd.f32 %v2375_v28, %v910_v37 }
 0x13b   : > { %v1008_v33 = vpop.f32.mrf.mxu0  ;;  %v1825_v37 = vadd.f32 %v1824_v29, %v1823_v21  ;;  %v2732_v29 = vmov 1.0  }
 0x13c   : > { %v2364_v34 = vpop.f32.mrf.mxu1  ;;  %v1009_v48 = vadd.f32 %v1008_v33, %v902_v38 }
 0x13d   : > { %v2378_v41 = vpop.f32.mrf.mxu0  ;;  %v926_v44 = vadd.f32 %v2364_v34, %v825_v36  ;;  %v1854_v34 = vadd.f32 %v1853_v26, %v1852_v17 }
 0x13e   : > { %v917_v40 = vpop.f32.mrf.mxu1 }
 0x13f   : > { %v918_v49 = vadd.f32 %v917_v40, %v818_v42  ;;  %v1020_v51 = vpop.f32.mrf.mxu0  ;;  %v1027_v53 = vadd.f32 %v2378_v41, %v926_v44  ;;  %v1164_v40 = vcvt.s32.f32 %v3127_v31  ;;  %v1165_v44 = vcvt.s32.f32 %v1162_v35 }
 0x140   : > { %v2389_v46 = vpop.f32.mrf.mxu1 }
 0x141   : > { %v1108_v54 = vadd.f32 %v2389_v46, %v1015_v1  ;;  %v1021_v59 = vadd.f32 %v1020_v51, %v918_v49  ;;  %v1192_v46 = vld [vmem:[%s3434_s7 + $0x8] sm:$0xff] }
 0x142   : > { %v1101_v52 = vpop.f32.mrf.mxu1 }
 0x143   : > { %v1102_v55 = vadd.f32 %v1101_v52, %v1009_v48  ;;  %v1142_v4 = vsub.f32 %v1134_v58, %v1108_v54  ;;  %v1203_v54 = vsel %vm1195_vm2, %v1193_v47, 0 }
 0x144   : > { %v2392_v56 = vpop.f32.mrf.mxu1 }
 0x145   : > { %v1141_v60 = vsub.f32 %v1129_v43, %v1102_v55  ;;  %v1120_v61 = vadd.f32 %v2392_v56, %v1027_v53  ;;  %v1200_v53 = vsel %vm1195_vm2, %v1192_v46, 0 }
 0x146   : > { %v1113_v0 = vpop.f32.mrf.mxu1 }
 0x147   : > { %v1150_v5 = vadd.f32 %v1148_v63, %v1120_v61  ;;  %v1114_v2 = vadd.f32 %v1113_v0, %v1021_v59  ;;  %v1151_v9 = vmin.f32 %v1141_v60, %v1142_v4  ;;  %v3143_v59 = vand.u32 4294901760, %v1200_v53 }
 0x149   : > { %v1839_v10 = vmul.f32 %v1150_v5, %v1150_v5  ;;  %v1143_v11 = vsub.f32 %v1139_v45, %v1114_v2  ;;  %v1830_v18 = vmul.f32 %v1150_v5, %v491_v20  ;;  %v1826_v45 = vld [vmem:[#allocation2] sm:$0x1]  ;;  %v3154_v2 = vand.u32 4294901760, %v1206_v62 }
 0x14b   : > { %v1840_v13 = vsel %vm1831_vm3, %v1839_v10, 0.0  ;;  %v1152_v14 = vmin.f32 %v1151_v9, %v1143_v11  ;;  %v1832_v27 = vsel %vm1831_vm3, %v1830_v18, 0.0 }
 0x14c   : > { %v1841_v16 = vrot.slane %v1840_v13, 4  ;;  %v1833_v33 = vrot.slane %v1832_v27, 4 }
 0x14d   : > { %v1153_v19 = vrot.slane %v1152_v14, 4 }
 0x14e   : > { %v1842_v22 = vadd.f32 %v1841_v16, %v1840_v13  ;;  %v1834_v42 = vadd.f32 %v1833_v33, %v1832_v27  ;;  %v3159_v13 = vsub.f32 %v1206_v62, %v3154_v2 }
 0x14f   : > { %v1154_v23 = vmin.f32 %v1152_v14, %v1153_v19 }
 0x150   : > { %v1843_v25 = vrot.slane %v1842_v22, 2  ;;  %v1835_v55 = vrot.slane %v1834_v42, 2 }
 0x151   : > { %v1155_v28 = vrot.slane %v1154_v23, 2 }
 0x152   : > { %v1844_v30 = vadd.f32 %v1843_v25, %v1842_v22  ;;  %v1836_v63 = vadd.f32 %v1835_v55, %v1834_v42 }
 0x153   : > { %v1156_v32 = vmin.f32 %v1154_v23, %v1155_v28  ;;  %v1308_v23 = vand.u32 4294901760, %v3159_v13 }
 0x154   : > { %v1845_v20 = vrot.slane %v1844_v30, 1  ;;  %v1837_v9 = vrot.slane %v1836_v63, 1 }
 0x155   : > { %v1157_v36 = vrot.slane %v1156_v32, 1 }
 0x156   : > { %v1846_v38 = vadd.f32 %v1845_v20, %v1844_v30  ;;  %v1838_v16 = vadd.f32 %v1837_v9, %v1836_v63  ;;  %v2733_v30 = vmov 0.0  }
 0x157   : > { %v1158_v41 = vmin.f32 %v1156_v32, %v1157_v36 }
 0x158   : > { %v1855_v43 = vmul.f32 %v1854_v34, %v1846_v38  ;;  %v1309_v38 = vsub.f32 %v3159_v13, %v1308_v23 }
 0x159   : > { %vm1166_vm4 = vcmp.eq.f32.partialorder %v1141_v60, %v1158_v41  ;;  %vm1167_vm5 = vcmp.eq.f32.partialorder %v1142_v4, %v1158_v41  ;;  %vm1168_vm6 = vcmp.eq.f32.partialorder %v1143_v11, %v1158_v41  ;;  %v1827_v1 = vadd.f32 %v1825_v37, %v1158_v41 }
 0x15a   : > { %v1856_v48 = vmax.f32 %v1855_v43, 1e-16  ;;  %v1169_v49 = vsel %vm1166_vm4, %v1163_v39, 24.0  ;;  %v1170_v50 = vsel %vm1167_vm5, %v1164_v40, 24.0  ;;  %v1171_v56 = vsel %vm1168_vm6, %v1165_v44, 24.0 }
 0x15b   : > { %v1172_v51 = vmin.f32 %v1169_v49, %v1170_v50  ;;  %v1828_v52 = vadd.f32 %v1827_v1, %v1826_v45  ;;  %v3145_v60 = vand.u32 4294901760, %v1203_v54  ;;  %v3149_v4 = vsub.f32 %v1200_v53, %v3143_v59  ;;  %v1881_v49 = vpop.permute.xlu1 %1880  ;;  %v1868_v50 = vpop.permute.xlu0 %1867 }
 0x15c   : > { %2567 = vrsqrt.f32 %v1856_v48  ;;  %v1310_v45 = vand.u32 4294901760, %v1309_v38  ;;  %v1897_v53 = vstv %s1896_s22 }
 0x15d   : > { %v1173_v58 = vmin.f32 %v1172_v51, %v1171_v56  ;;  %1829 = vst [vmem:[#allocation2] sm:$0x1] %v1828_v52  ;;  %v3152_v5 = vsub.f32 %v1203_v54, %v3145_v60  ;;  %v1288_v11 = vand.u32 4294901760, %v3149_v4  ;;  %vm1898_vm14 = vcmp.eq.s32.totalorder %v1897_v53, 1 }
 0x15f   : > { %v1174_v61 = vrot.slane %v1173_v58, 4  ;;  %v1298_v12 = vand.u32 4294901760, %v3152_v5  ;;  %v1289_v21 = vsub.f32 %v3149_v4, %v1288_v11 }
 0x161   : > { %v1175_v0 = vmin.f32 %v1173_v58, %v1174_v61  ;;  %v1299_v22 = vsub.f32 %v3152_v5, %v1298_v12  ;;  %v1290_v37 = vand.u32 4294901760, %v1289_v21 }
 0x163   : > { %v1176_v7 = vrot.slane %v1175_v0, 2 }
 0x165   : > { %v1177_v10 = vmin.f32 %v1175_v0, %v1176_v7 }
 0x167   : > { %v1178_v14 = vrot.slane %v1177_v10, 1 }
 0x169   : > { %v2568_v17 = vpop.eup %2567  ;;  %v3161_v18 = vmin.f32 %v1177_v10, %v1178_v14 }
 0x16a   : > { %v3163_v19 = vmul.f32 %v2568_v17, %v1838_v16 }
 0x16b   : > { %v2465_v25 = vtrunc.f32 %v3161_v18  ;;  %vm3174_vm7 = vcmp.eq.f32.partialorder %v1165_v44, %v3161_v18  ;;  %1876 = vrot.lane.b32.xlu1 %v3161_v18, %s2731_s18  ;;  %vm3180_vm8 = vcmp.eq.f32.partialorder %v1164_v40, %v3161_v18  ;;  %vm3185_vm9 = vcmp.eq.f32.partialorder %v1163_v39, %v3161_v18 }
 0x16c   : > { %1863 = vrot.lane.b32.xlu0 %v3163_v19, %s2731_s18  ;;  %2393 = vmatprep.subr.msk.mxu0 %vm3174_vm7, %v2732_v29  ;;  %v2200_v31 = vsel %vm3174_vm7, 1.0, %v2733_v30  ;;  %v2199_v32 = vsel %vm3180_vm8, 1.0, %v2733_v30  ;;  %v2198_v33 = vsel %vm3185_vm9, 1.0, %v2733_v30  ;;  %v1300_v39 = vand.u32 4294901760, %v1299_v22 }
 0x16d   : > { %v2466_v20 = vcvt.f32.s32 %v2465_v25  ;;  %2394 = vmatpush3.msk.msra.mxu0 %vm3174_vm7, %v2732_v29  ;;  %v1344_v34 = vsub.f32 %v2200_v31, %v2200_v31  ;;  %v1351_v35 = vsub.f32 %v2199_v32, %v2199_v32  ;;  %v1358_v36 = vsub.f32 %v2198_v33, %v2198_v33 }
 0x16e   : > { %2395 = vmatprep.subr.msk.mxu0 %vm3180_vm8, %v2732_v29 }
 0x16f   : > { %1181 = vst [vmem:[%s437_s14] sm:$0x1] %v2466_v20  ;;  %1911 = vrot.lane.b32.xlu1 %v3161_v18, %s2731_s18  ;;  %2396 = vmatpush3.msk.msra.mxu0 %vm3180_vm8, %v2732_v29  ;;  %v1345_v40 = vand.u32 4294901760, %v1344_v34  ;;  %v1352_v41 = vand.u32 4294901760, %v1351_v35  ;;  %v1359_v42 = vand.u32 4294901760, %v1358_v36 }
 0x170   : > { %1905 = vrot.lane.b32.xlu0 %v3163_v19, %s2731_s18  ;;  %2397 = vmatprep.subr.msk.mxu0 %vm3185_vm9, %v2732_v29 }
 0x171   : > { %2398 = vmatpush3.msk.msra.mxu0 %vm3185_vm9, %v2732_v29  ;;  %v1346_v43 = vsub.f32 %v1344_v34, %v1345_v40  ;;  %v1353_v44 = vsub.f32 %v1351_v35, %v1352_v41  ;;  %v1360_v47 = vsub.f32 %v1358_v36, %v1359_v42 }
 0x172   : > { %2400 = vmatmul.mubr.f32.vlgmr.msra.gmra.mxu0 %v1290_v37  ;;  %2417 = vmatprep.subr.mxu0 %v1344_v34 }
 0x173   : > { %2418 = vmatpush3.msra.mxu0 %v1344_v34  ;;  %2402 = vmatprep.mubr.f32.mxu0 %v1300_v39  ;;  %v1347_v46 = vand.u32 4294901760, %v1346_v43  ;;  %v1354_v1 = vand.u32 4294901760, %v1353_v44  ;;  %v1361_v48 = vand.u32 4294901760, %v1360_v47 }
 0x174   : > { %2419 = vmatprep.subr.mxu0 %v1351_v35 }
 0x175   : > { %2405 = vmatprep.subr.mxu1 %v1347_v46  ;;  %2420 = vmatpush3.msra.mxu0 %v1351_v35 }
 0x176   : > { %2403 = vmatmul.mubr.f32.gmra.mxu0 %v1310_v45  ;;  %2406 = vmatpush3.msra.mxu1 %v1347_v46 }
 0x177   : > { %2421 = vmatprep.subr.mxu0 %v1358_v36  ;;  %2407 = vmatprep.subr.mxu1 %v1354_v1 }
 0x178   : > { %2422 = vmatpush3.msra.mxu0 %v1358_v36  ;;  %2408 = vmatpush3.msra.mxu1 %v1354_v1 }
 0x179   : > { %2441 = vmatprep.subr.mxu0 %v1345_v40  ;;  %2409 = vmatprep.subr.mxu1 %v1361_v48 }
 0x17a   : > { %2423 = vmatprep.mubr.f32.mxu0 %v3110_v8  ;;  %2410 = vmatpush3.msra.mxu1 %v1361_v48  ;;  %v1860_v8 = vand.u32 127, %v1159_v15 }
 0x17b   : > { %2424 = vmatmul.mubr.f32.vlgmr.msra.gmra.mxu0 %v3149_v4  ;;  %2412 = vmatmul.mubr.f32.vlgmr.msra.gmra.mxu1 %v3143_v59 }
 0x17c   : > { %2442 = vmatpush3.msra.mxu0 %v1345_v40  ;;  %2429 = vmatprep.subr.msk.mxu1 %vm3174_vm7, %v2732_v29  ;;  %vm1861_vm10 = vcmp.eq.s32.totalorder %v1860_v8, 0  ;;  %vm1894_vm12 = vcmp.gt.s32.totalorder %v1860_v8, 0 }
 0x17d   : > { %2443 = vmatprep.subr.mxu0 %v1352_v41  ;;  %2430 = vmatpush3.msk.msra.mxu1 %vm3174_vm7, %v2732_v29  ;;  %vm1899_vm15 = vmor %vm1894_vm12, %vm1898_vm14 }
 0x17e   : > { %2444 = vmatpush3.msra.mxu0 %v1352_v41  ;;  %2431 = vmatprep.subr.msk.mxu1 %vm3180_vm8, %v2732_v29 }
 0x17f   : > { %2445 = vmatprep.subr.mxu0 %v1359_v42  ;;  %2414 = vmatprep.mubr.f32.mxu1 %v3145_v60 }
 0x180   : > { %2432 = vmatpush3.msk.msra.mxu1 %vm3180_vm8, %v2732_v29  ;;  %2446 = vmatpush3.msra.mxu0 %v1359_v42 }
 0x181   : > { %2415 = vmatmul.mubr.f32.gmra.mxu1 %v3154_v2  ;;  %2433 = vmatprep.subr.msk.mxu1 %vm3185_vm9, %v2732_v29 }
 0x182   : > { %2426 = vmatprep.mubr.f32.mxu0 %v3152_v5  ;;  %2434 = vmatpush3.msk.msra.mxu1 %vm3185_vm9, %v2732_v29 }
 0x183   : > { %2427 = vmatmul.mubr.f32.gmra.mxu0 %v3159_v13  ;;  %2453 = vmatprep.subr.msk.mxu1 %vm3174_vm7, %v2732_v29 }
 0x184   : > { %2435 = vmatprep.mubr.f32.mxu1 %v1278_v3  ;;  %2447 = vmatprep.mubr.f32.mxu0 %v3107_v6  ;;  %v1872_v3 = vsub.s32 0, %v3123_v24 }
 0x185   : > { %2436 = vmatmul.mubr.f32.vlgmr.msra.gmra.mxu1 %v1288_v11 }
 0x186   : > { %2454 = vmatpush3.msk.msra.mxu1 %vm3174_vm7, %v2732_v29  ;;  %2438 = vmatprep.mubr.f32.mxu1 %v1298_v12  ;;  %v1886_v51 = vrot.slane %v1881_v49, %v1872_v3  ;;  %v1873_v52 = vrot.slane %v1868_v50, %v1872_v3 }
 0x187   : > { %2455 = vmatprep.subr.msk.mxu1 %vm3180_vm8, %v2732_v29  ;;  %2448 = vmatmul.mubr.f32.vlgmr.msra.gmra.mxu0 %v3143_v59 }
 0x188   : > { %2456 = vmatpush3.msk.msra.mxu1 %vm3180_vm8, %v2732_v29  ;;  %2450 = vmatprep.mubr.f32.mxu0 %v3145_v60 }
 0x189   : > { %2457 = vmatprep.subr.msk.mxu1 %vm3185_vm9, %v2732_v29  ;;  %2439 = vmatmul.mubr.f32.gmra.mxu1 %v1308_v23 }
 0x18a   : > { %2458 = vmatpush3.msk.msra.mxu1 %vm3185_vm9, %v2732_v29  ;;  %2459 = vmatprep.mubr.f32.mxu1 %v3107_v6 }
 0x18b   : > { %2451 = vmatmul.mubr.f32.gmra.mxu0 %v3154_v2 }
 0x18d   : > { %2460 = vmatmul.mubr.f32.vlgmr.msra.gmra.mxu1 %v3143_v59 }
 0x18e   : > { %2462 = vmatprep.mubr.f32.mxu1 %v3145_v60  ;;  %v1900_v60 = vld [vmem:[#allocation3] sm:$0x1] }
 0x191   : > { %2463 = vmatmul.mubr.f32.gmra.mxu1 %v3154_v2 }
 0x1dd   : > { %v1877_v6 = vpop.permute.xlu1 %1876 }
 0x1de   : > { %v1887_v54 = vsel %vm1861_vm10, %v1886_v51, %v1877_v6  ;;  %v1864_v55 = vpop.permute.xlu0 %1863 }
 0x1df   : > { %v1874_v56 = vsel %vm1861_vm10, %v1873_v52, %v1864_v55  ;;  %vm1890_vm13 = vcmp.ne.f32.partialorder %v3161_v18, %v1887_v54 }
 0x1e0   : > { %v1888_v15 = vsub.f32 %v3163_v19, %v1874_v56  ;;  %v2210_v59 = vsel %vm1890_vm13, 1.0, %v2733_v30 }
 0x1e1   : > { %v1912_v57 = vpop.permute.xlu1 %1911 }
 0x1e2   : > { %v1889_v24 = vand.u32 2147483647, %v1888_v15  ;;  %1914 = vst.msk [vmem:[#allocation5] sm:$0x1] %vm1908_vm11, %v1912_v57  ;;  %v1906_v58 = vpop.permute.xlu0 %1905 }
 0x1e3   : > { %1909 = vst.msk [vmem:[#allocation4] sm:$0x1] %vm1908_vm11, %v1906_v58 }
 0x1e4   : > { %v1893_v61 = vmul.f32 %v2210_v59, %v1889_v24 }
 0x1e6   : > { %v1901_v62 = vsel %vm1899_vm15, %v1893_v61, 0.0 }
 0x1e7   : > { %v1902_v63 = vadd.f32 %v1901_v62, %v1900_v60 }
 0x1e9   : > { %1903 = vst [vmem:[#allocation3] sm:$0x1] %v1902_v63 }
 0x232   : > { %v2401_v0 = vpop.f32.mrf.mxu0 }
 0x234   : > { %v1282_v4 = vpop.f32.mrf.mxu0 }
 0x236   : > { %v2404_v5 = vpop.f32.mrf.mxu0 }
 0x238   : > { %v1302_v2 = vpop.f32.mrf.mxu0 }
 0x23b   : > { %v2413_v7 = vpop.f32.mrf.mxu1  ;;  %v2425_v9 = vpop.f32.mrf.mxu0 }
 0x23c   : > { %v1405_v13 = vadd.f32 %v2413_v7, %v2401_v0 }
 0x23d   : > { %v1398_v10 = vpop.f32.mrf.mxu1  ;;  %v1494_v11 = vpop.f32.mrf.mxu0 }
 0x23e   : > { %v1399_v17 = vadd.f32 %v1398_v10, %v1282_v4  ;;  %v1502_v21 = vadd.f32 %v2425_v9, %v1405_v13 }
 0x240   : > { %v1495_v26 = vadd.f32 %v1494_v11, %v1399_v17 }
 0x241   : > { %v2416_v12 = vpop.f32.mrf.mxu1 }
 0x242   : > { %v1417_v22 = vadd.f32 %v2416_v12, %v2404_v5 }
 0x243   : > { %v1410_v14 = vpop.f32.mrf.mxu1  ;;  %v2428_v16 = vpop.f32.mrf.mxu0 }
 0x244   : > { %v1411_v27 = vadd.f32 %v1410_v14, %v1302_v2  ;;  %v1516_v31 = vadd.f32 %v2428_v16, %v1417_v22 }
 0x245   : > { %v1508_v18 = vpop.f32.mrf.mxu0  ;;  %v2437_v19 = vpop.f32.mrf.mxu1 }
 0x246   : > { %v1600_v28 = vadd.f32 %v2437_v19, %v1502_v21  ;;  %v1509_v34 = vadd.f32 %v1508_v18, %v1411_v27 }
 0x247   : > { %v1591_v23 = vpop.f32.mrf.mxu1  ;;  %v2449_v25 = vpop.f32.mrf.mxu0 }
 0x248   : > { %v1592_v32 = vadd.f32 %v1591_v23, %v1495_v26  ;;  %v1702_v35 = vadd.f32 %v2449_v25, %v1600_v28 }
 0x249   : > { %v2440_v29 = vpop.f32.mrf.mxu1  ;;  %v1695_v30 = vpop.f32.mrf.mxu0 }
 0x24a   : > { %v1616_v36 = vadd.f32 %v2440_v29, %v1516_v31  ;;  %v1696_v38 = vadd.f32 %v1695_v30, %v1592_v32 }
 0x24b   : > { %v1607_v33 = vpop.f32.mrf.mxu1  ;;  %v2452_v20 = vpop.f32.mrf.mxu0 }
 0x24c   : > { %v1608_v39 = vadd.f32 %v1607_v33, %v1509_v34  ;;  %v1714_v43 = vadd.f32 %v2452_v20, %v1616_v36 }
 0x24d   : > { %v2461_v37 = vpop.f32.mrf.mxu1  ;;  %v1707_v41 = vpop.f32.mrf.mxu0 }
 0x24e   : > { %v1794_v40 = vadd.f32 %v2461_v37, %v1702_v35  ;;  %v1708_v46 = vadd.f32 %v1707_v41, %v1608_v39 }
 0x24f   : > { %v1787_v42 = vpop.f32.mrf.mxu1 }
 0x250   : > { %1810 = vst [vmem:[%s2917_s15 + $0x8] sm:$0xff] %v1794_v40  ;;  %v1788_v44 = vadd.f32 %v1787_v42, %v1696_v38 }
 0x251   : > { %v2464_v45 = vpop.f32.mrf.mxu1 }
 0x252   : > { %1809 = vst [vmem:[%s2917_s15] sm:$0xff] %v1788_v44  ;;  %v1806_v47 = vadd.f32 %v2464_v45, %v1714_v43  ;;  %1918 = sbr.rel (%p2211_p5) target bundleno = 807 (0x327), region = 56 }
 0x253   : > { %v1799_v1 = vpop.f32.mrf.mxu1 }
 0x254   : > { %1812 = vst [vmem:[%s2917_s15 + $0x18] sm:$0xff] %v1806_v47  ;;  %v1800_v48 = vadd.f32 %v1799_v1, %v1708_v46 }
 0x256   : > { %1811 = vst [vmem:[%s2917_s15 + $0x10] sm:$0xff] %v1800_v48 }
 0x257   : > { %v1919_v8 = vld [vmem:[#allocation2] sm:$0x1]  ;;  %vm1920_vm0 = vcmask 1040384   ;;  %v1933_v3 = vld [vmem:[#allocation3] sm:$0x1] }
 0x258   : > { %v1921_v49 = vsel %vm1920_vm0, %v1919_v8, 0.0  ;;  %v1934_v50 = vsel %vm1920_vm0, %v1933_v3, 0.0 }
 0x259   : > { %1922 = vadd.xlane.f32.xlu0 %v1921_v49 }
 0x25d   : > { %1935 = vadd.xlane.f32.xlu0 %v1934_v50 }
 0x2e2   : > { %v1923_v51 = vpop.xlane.xlu0 %1922 }
 0x2e3   : > { %v1924_v52 = vrot.slane %v1923_v51, 4 }
 0x2e5   : > { %v1925_v6 = vadd.f32 %v1924_v52, %v1923_v51 }
 0x2e6   : > { %v1936_v53 = vpop.xlane.xlu0 %1935 }
 0x2e7   : > { %v1926_v54 = vrot.slane %v1925_v6, 2  ;;  %v1937_v55 = vrot.slane %v1936_v53, 4 }
 0x2e9   : > { %v1938_v56 = vadd.f32 %v1937_v55, %v1936_v53  ;;  %v1927_v15 = vadd.f32 %v1926_v54, %v1925_v6 }
 0x2eb   : > { %v1939_v57 = vrot.slane %v1938_v56, 2  ;;  %v1928_v24 = vrot.slane %v1927_v15, 1 }
 0x2ed   : > { %v1940_v58 = vadd.f32 %v1939_v57, %v1938_v56  ;;  %v1929_v59 = vadd.f32 %v1928_v24, %v1927_v15 }
 0x2ef   : > { %2467 = vpush %v1929_v59  ;;  %v1941_v60 = vrot.slane %v1940_v58, 1 }
 0x2f1   : > { %v1942_v61 = vadd.f32 %v1941_v60, %v1940_v58 }
 0x2f3   : > { %2469 = vpush %v1942_v61 }
 0x320   : > { %s2468_s26 = spop %2467 }
 0x321   : > { %v1931_v62 = vstv %s2468_s26 }
 0x322   : > { %1932 = vst.msk [vmem:[%s471_s6] sm:$0x1] %vm1908_vm11, %v1931_v62 }
 0x324   : > { %s2470_s29 = spop %2469 }
 0x325   : > { %v1944_v63 = vstv %s2470_s29 }
 0x326   : > { %1945 = vst.msk [vmem:[%s476_s4] sm:$0x1] %vm1908_vm11, %v1944_v63 }
 0x327 PF: > { %s2213_s20 = sshll.u32 %s2711_s13, 3  ;;  %s1975_s25 = sshll.u32 %s2917_s15, 4  ;;  %s3311_s25 = int_to_ptr.vmem [resolvable:$true] %s1975_s25 }
 0x328   : > { %s1972_s27 = sadd.s32 %s2707_s12, %s2213_s20  ;;  %s3442_s26 = sld [smem:[#allocation27_spill]] }
 0x329   : > { %s2214_s18 = sshll.u32 %s1972_s27, 7  ;;  %s1947_s4 = scalar_lea.sflag [#allocation8], %s2887_s23 }
 0x32a   : > { %s2597_s21 = scalar_lea.vmem %s3311_s25, 512  ;;  %s2734_s24 = smov [#allocation9]  }
 0x32b   : > { %p2598_p6 = scmp.ne.s32.totalorder %s3311_s25, %s2597_s21  ;;  %s2601_s29 = sshll.u32 %s2734_s24, 4  ;;  %s2602_s29 = int_to_ptr.vmem [resolvable:$false] %s2601_s29 }
 0x32c   : > { %s2603_s15 = scalar_lea.vmem %s2602_s29, 1024  ;;  %p2604_p11 = scmp.lt.s32.totalorder %s3311_s25, %s2602_s29 }
 0x32d   : > { %p2599_p7 = pnand %p2598_p6, %p2854_p9  ;;  %p2605_p3 = scmp.lt.s32.totalorder %s2603_s15, %s2597_s21 }
 0x32e   : > { %s3316_s2 = scalar_lea.hbm %s3442_s26, %s2214_s18 }
 0x32f   : > { %p2600_p10 = pneg %p2599_p7  ;;  %p2606_p13 = por %p2605_p3, %p2604_p11 }
 0x331   : > { %p2607_p1 = pnand %p2606_p13, %p2600_p10 }
 0x333   : > { %2610 = shalt.err (!%p2607_p1)
}
 0x334   : > { %s2611_s0 = scalar_lea.hbm %s3316_s2, 512  ;;  %s2615_s27 = scalar_lea.hbm %s3442_s26, 2048 }
 0x335   : > { %p2612_p0 = scmp.ne.s32.totalorder %s3316_s2, %s2611_s0  ;;  %p2616_p4 = scmp.lt.s32.totalorder %s3316_s2, %s3442_s26 }
 0x336   : > { %p2617_p5 = scmp.lt.s32.totalorder %s2615_s27, %s2611_s0 }
 0x337   : > { %p2613_p2 = pnand %p2612_p0, %p2854_p9 }
 0x338   : > { %p2618_p6 = por %p2617_p5, %p2616_p4 }
 0x339   : > { %p2614_p8 = pneg %p2613_p2 }
 0x33b   : > { %p2619_p7 = pnand %p2618_p6, %p2614_p8 }
 0x33d   : > { %2622 = shalt.err (!%p2619_p7)
}
 0x33e   : > { %s2735_s22 = smov 128   ;;  %s2736_s21 = smov 256  }
 0x33f   : > { %s2737_s24 = smov 8   ;;  %s2215_s29 = sshll.u32 %s2711_s13, 1 }
 0x340   : > { %2473 = dma.vmem_to_hbm [thread:$0]  (%p2854_p9), %s3311_s25, 512, %s3316_s2, %s1947_s4, %s2735_s22, %s2736_s21, %s2737_s24  }
 0x341   : > { %s1991_s15 = sadd.s32 %s2707_s12, %s2215_s29  ;;  %s1995_s0 = sshll.u32 %s437_s14, 4  ;;  %s1996_s0 = int_to_ptr.vmem [resolvable:$true] %s1995_s0 }
 0x342   : > { %s2216_s30 = sshll.u32 %s1991_s15, 4  ;;  %s3443_s18 = sld [smem:[#allocation28_spill]] }
 0x343   : > { %s1952_s1 = scalar_lea.sflag [#allocation11], %s2887_s23  ;;  %s2623_s3 = scalar_lea.vmem %s1996_s0, 16 }
 0x344   : > { %p2624_p10 = scmp.ne.s32.totalorder %s1996_s0, %s2623_s3  ;;  %s2738_s5 = smov [#allocation10]  }
 0x345   : > { %s2627_s7 = sshll.u32 %s2738_s5, 4  ;;  %s2628_s7 = int_to_ptr.vmem [resolvable:$false] %s2627_s7 }
 0x346   : > { %p2625_p11 = pnand %p2624_p10, %p2854_p9  ;;  %s2629_s25 = scalar_lea.vmem %s2628_s7, 32 }
 0x347   : > { %p2630_p13 = scmp.lt.s32.totalorder %s1996_s0, %s2628_s7  ;;  %p2631_p1 = scmp.lt.s32.totalorder %s2629_s25, %s2623_s3 }
 0x348   : > { %s1993_s6 = scalar_lea.hbm %s3443_s18, %s2216_s30  ;;  %p2626_p3 = pneg %p2625_p11 }
 0x349   : > { %p2632_p0 = por %p2631_p1, %p2630_p13 }
 0x34b   : > { %p2633_p2 = pnand %p2632_p0, %p2626_p3 }
 0x34d   : > { %2636 = shalt.err (!%p2633_p2)
}
 0x34e   : > { %s2637_s12 = scalar_lea.hbm %s1993_s6, 16  ;;  %s2641_s23 = scalar_lea.hbm %s3443_s18, 64 }
 0x34f   : > { %p2638_p8 = scmp.ne.s32.totalorder %s1993_s6, %s2637_s12  ;;  %p2642_p6 = scmp.lt.s32.totalorder %s1993_s6, %s3443_s18 }
 0x350   : > { %p2643_p7 = scmp.lt.s32.totalorder %s2641_s23, %s2637_s12 }
 0x351   : > { %p2639_p4 = pnand %p2638_p8, %p2854_p9 }
 0x352   : > { %p2644_p10 = por %p2643_p7, %p2642_p6 }
 0x353   : > { %p2640_p5 = pneg %p2639_p4 }
 0x355   : > { %p2645_p11 = pnand %p2644_p10, %p2640_p5 }
 0x357   : > { %2648 = shalt.err (!%p2645_p11)
}
 0x358   : > { %2474 = dma.vmem_to_hbm [thread:$0]  (%p2854_p9), %s1996_s0, 16, %s1993_s6, %s1952_s1  }
 0x359 PF: > { %s3444_s3 = sld [smem:[#allocation15_spill]]  ;;  %p2489_p3 = scmp.ge.s32.totalorder %s2723_s16, 2 }
 0x35b   : > { %p2482_p13 = pnand %p2489_p3, %p2860_p12 }
 0x35d   : > { %p2483_p1 = pneg %p2482_p13 }
 0x35f   : > { %s2015_s5 = sand.u32 1, %s3444_s3  }
 0x360   : > { %s2016_s7 = scalar_lea.sflag [#allocation8], %s2015_s5 }
 0x361   : > { %2686 = dma.done.wait (%p2483_p1), %s2016_s7, 512  }
 0x362   : > { %2688 = vsyncadd (%p2483_p1), %s2016_s7, 4294966784  ;;  %s2025_s22 = scalar_lea.sflag [#allocation11], %s2015_s5 }
 0x363   : > { %2690 = dma.done.wait (%p2483_p1), %s2025_s22, 16  }
 0x364   : > { %2692 = vsyncadd (%p2483_p1), %s2025_s22, 4294967280  ;;  %s29_s16 = sadd.s32 1, %s2723_s16   ;;  %s3445_s12 = sld [smem:[#allocation16_spill]] }
 0x365   : > { %p26_p0 = scmp.ge.s32.totalorder %s29_s16, 6   ;;  %s3446_s13 = sld [smem:[#allocation17_spill]] }
 0x366   : > { %s3447_s14 = sld [smem:[#allocation18_spill]]  ;;  %s3449_s30 = smov %s2699_s10 }
 0x367   : > { %s3448_s15 = sld [smem:[#allocation19_spill]]  ;;  %s3450_s10 = smov %s2703_s11 }
 0x368   : > { %s3451_s11 = smov %s2867_s17  ;;  %28 = sbr.rel (!%p26_p0) target bundleno = 18 (0x12), region = 141 }
 0x36d   :  { %2043 = vsyncpa [#allocation7], 1 }
 0x36e   :  { %2045 = vsyncpa [#allocation7 + $0x1], 1 }
 0x36f   :  { %2046 = vsyncpa [#allocation8], 1 }
 0x370   :  { %2048 = vsyncpa [#allocation8 + $0x1], 1 }
 0x371   :  { %2049 = vsyncpa [#allocation11], 1 }
 0x372   :  { %2051 = vsyncpa [#allocation11 + $0x1], 1 }

</bundles_post_ra>
